<compile_context>
chip_gen: v7x
topology: tpu7x:2x2x1
jax: 0.10.0
libtpu: 0.0.40
codegen_flags: <defaults>
</compile_context>

<pallas_src>
import jax
import jax.numpy as jnp
from jax.experimental import pallas as pl
from jax.experimental.pallas import tpu as pltpu

K = 1    # latent dim
H = 16   # hidden dim

# ---- packed parameter layout (float32 [40, 32]) ----
#   rows 0:16,  cols 0:16 -> W2 (encoder Linear(16,16), PyTorch [out, in])
#   rows 16:32, cols 0:16 -> W5 (decoder Linear(16,16))
#   rows 32:34, cols 0:16 -> W3 (encoder Linear(16, 2K))
#   row  34,    cols 0:16 -> W6 (decoder Linear(16, 1))
#   col 16 rows 0:16 -> W1[:,0]   col 17 -> W4[:,0]
#   col 18 -> b1  col 19 -> b2  col 20 rows 0:2 -> b3
#   col 21 -> b4  col 22 -> b5  col 23 row 0 -> b6
_P_ROWS, _P_COLS = 40, 32


def _dense_vpu(w, h, b):
    """y = w @ h + b via unrolled VPU broadcast-FMAs (contraction dim stays off MXU).

    w: [out, kdim], h: [kdim, tile_n], b: [out, 1]  ->  [out, tile_n]
    """
    kdim = h.shape[0]
    acc = w[:, 0:1] * h[0:1, :]
    for k in range(1, kdim):
        acc = acc + w[:, k:k + 1] * h[k:k + 1, :]
    return acc + b


def _vae_kernel(x_ref, eps_ref, p_ref, out_ref):
    x = x_ref[...]      # [1, tile_n]   (batch on lanes)
    eps = eps_ref[...]  # [K, tile_n]
    p = p_ref[...]      # [40, 32] packed params (VMEM-resident across the grid)

    w2 = p[0:H, 0:H]
    w5 = p[H:2 * H, 0:H]
    w3 = p[2 * H:2 * H + 2 * K, 0:H]
    w6 = p[2 * H + 2 * K:2 * H + 2 * K + 1, 0:H]
    w1 = p[0:H, 16:17]        # [H, 1]
    w4 = p[0:H, 17:18]
    b1 = p[0:H, 18:19]
    b2 = p[0:H, 19:20]
    b3 = p[0:2 * K, 20:21]    # [2K, 1]
    b4 = p[0:H, 21:22]
    b5 = p[0:H, 22:23]
    b6 = p[0:1, 23:24]        # [1, 1]

    # ---- encoder ----
    h = jnp.maximum(w1 * x + b1, 0.0)             # Linear(1,16)+ReLU   -> [H, tile]
    h = jnp.maximum(_dense_vpu(w2, h, b2), 0.0)   # Linear(16,16)+ReLU  -> [H, tile]
    enc = _dense_vpu(w3, h, b3)                   # Linear(16,2K)       -> [2K, tile]
    mu = enc[0:K, :]
    log_var = enc[K:2 * K, :]

    # ---- reparameterization ----
    std = jnp.exp(0.5 * log_var)
    z = mu + eps * std                            # [K, tile]

    # ---- decoder ----
    h = jnp.maximum(w4 * z + b4, 0.0)             # Linear(K,16)+ReLU
    h = jnp.maximum(_dense_vpu(w5, h, b5), 0.0)   # Linear(16,16)+ReLU
    dec = _dense_vpu(w6, h, b6)                   # Linear(16,1)        -> [1, tile]

    # ---- fused lane-dense output slab: row 0 = dec, row 1 = mu, row 2 = log_var ----
    out_ref[0:1, :] = dec
    out_ref[1:K + 1, :] = mu
    out_ref[K + 1:2 * K + 1, :] = log_var


def pack_params(params):
    """Pack PyTorch-layout params (w: [out, in], b: [out]) into one [40, 32] buffer."""
    w1, b1, w2, b2, w3, b3, w4, b4, w5, b5, w6, b6 = params
    p = jnp.zeros((_P_ROWS, _P_COLS), jnp.float32)
    p = p.at[0:H, 0:H].set(w2)
    p = p.at[H:2 * H, 0:H].set(w5)
    p = p.at[2 * H:2 * H + 2 * K, 0:H].set(w3)
    p = p.at[2 * H + 2 * K, 0:H].set(w6[0])
    p = p.at[0:H, 16].set(w1[:, 0])
    p = p.at[0:H, 17].set(w4[:, 0])
    p = p.at[0:H, 18].set(b1)
    p = p.at[0:H, 19].set(b2)
    p = p.at[0:2 * K, 20].set(b3)
    p = p.at[0:H, 21].set(b4)
    p = p.at[0:H, 22].set(b5)
    p = p.at[0, 23].set(b6[0])
    return p


def vae_forward(x, eps, packed_params, *, tile_n=256):
    """x: [N, 1], eps: [N, K]  ->  (dec [N, 1], mu [N, K], log_var [N, K])."""
    n = x.shape[0]
    assert n % tile_n == 0 and tile_n % 128 == 0
    grid = (n // tile_n,)

    x_t = x.T      # [1, N]  batch on lanes (layout plumbing in the wrapper)
    eps_t = eps.T  # [K, N]

    out = pl.pallas_call(
        _vae_kernel,
        out_shape=jax.ShapeDtypeStruct((2 * K + 1, n), jnp.float32),
        grid_spec=pltpu.PrefetchScalarGridSpec(
            num_scalar_prefetch=0,
            grid=grid,
            in_specs=[
                pl.BlockSpec((1, tile_n), lambda i: (0, i)),
                pl.BlockSpec((K, tile_n), lambda i: (0, i)),
                # constant block index -> packed params DMA'd once, stay VMEM-resident
                pl.BlockSpec((_P_ROWS, _P_COLS), lambda i: (0, 0)),
            ],
            out_specs=pl.BlockSpec((2 * K + 1, tile_n), lambda i: (0, i)),
        ),
        compiler_params=pltpu.CompilerParams(
            dimension_semantics=("parallel",)),
    )(x_t, eps_t, packed_params)

    dec = out[0:1, :].T
    mu = out[1:K + 1, :].T
    log_var = out[K + 1:2 * K + 1, :].T
    return dec, mu, log_var


# ---------------- deterministic init + pure-JAX reference ----------------

def _init_linear(key, fan_in, fan_out):
    """Mimic torch.nn.Linear default init: U(-1/sqrt(fan_in), 1/sqrt(fan_in))."""
    kw, kb = jax.random.split(key)
    bound = 1.0 / (fan_in ** 0.5)
    w = jax.random.uniform(kw, (fan_out, fan_in), jnp.float32, -bound, bound)
    b = jax.random.uniform(kb, (fan_out,), jnp.float32, -bound, bound)
    return w, b


def make_params(key):
    keys = jax.random.split(key, 6)
    w1, b1 = _init_linear(keys[0], 1, H)        # encoder Linear(1, 16)
    w2, b2 = _init_linear(keys[1], H, H)        # encoder Linear(16, 16)
    w3, b3 = _init_linear(keys[2], H, 2 * K)    # encoder Linear(16, 2K)
    w4, b4 = _init_linear(keys[3], K, H)        # decoder Linear(K, 16)
    w5, b5 = _init_linear(keys[4], H, H)        # decoder Linear(16, 16)
    w6, b6 = _init_linear(keys[5], H, 1)        # decoder Linear(16, 1)
    return (w1, b1, w2, b2, w3, b3, w4, b4, w5, b5, w6, b6)


def vae_reference(x, eps, params):
    w1, b1, w2, b2, w3, b3, w4, b4, w5, b5, w6, b6 = params
    hi = jax.lax.Precision.HIGHEST
    lin = lambda h, w, b: jnp.dot(h, w.T, precision=hi) + b
    h = jax.nn.relu(lin(x, w1, b1))
    h = jax.nn.relu(lin(h, w2, b2))
    enc = lin(h, w3, b3)
    mu, log_var = enc[:, 0:K], enc[:, K:]
    z = mu + eps * jnp.exp(0.5 * log_var)
    h = jax.nn.relu(lin(z, w4, b4))
    h = jax.nn.relu(lin(h, w5, b5))
    dec = lin(h, w6, b6)
    return dec, mu, log_var


if __name__ == "__main__":
    N = 1024       # batch rows per call (amortizes launch/DMA overhead)
    TILE_N = 256   # lane-dense batch tile per grid step (multiple of 128)

    root = jax.random.PRNGKey(0)
    k_params, k_x, k_eps = jax.random.split(root, 3)

    params = make_params(k_params)
    packed = pack_params(params)
    x = jax.random.normal(k_x, (N, 1), jnp.float32)
    # TODO(synk): torch.randn_like(std) is sampled outside the kernel (deterministic
    # jax.random) and passed in as eps; in-kernel pltpu.prng_* could replace this.
    eps = jax.random.normal(k_eps, (N, K), jnp.float32)

    dec, mu, log_var = vae_forward(x, eps, packed, tile_n=TILE_N)
    jax.block_until_ready((dec, mu, log_var))

    dec_r, mu_r, lv_r = vae_reference(x, eps, params)
    assert dec.shape == (N, 1) and mu.shape == (N, K) and log_var.shape == (N, K)
    assert jnp.allclose(mu, mu_r, atol=1e-4, rtol=1e-3)
    assert jnp.allclose(log_var, lv_r, atol=1e-4, rtol=1e-3)
    assert jnp.allclose(dec, dec_r, atol=1e-4, rtol=1e-3)
    print("KERNEL_OK")
</pallas_src>

<mosaic_0001>
module attributes {stable_mosaic.version = 11 : i64} {
  func.func @_vae_kernel(%arg0: i32, %arg1: memref<1x256xf32, #tpu.memory_space<vmem>>, %arg2: memref<1x256xf32, #tpu.memory_space<vmem>>, %arg3: memref<40x32xf32, #tpu.memory_space<vmem>>, %arg4: memref<3x256xf32, #tpu.memory_space<vmem>>) attributes {dimension_semantics = [#tpu.dimension_semantics<parallel>], iteration_bounds = array<i64: 4>, scalar_prefetch = 0 : i64, scratch_operands = 0 : i64, tpu.core_type = #tpu.core_type<tc>, window_params = [{transform_indices = @transform_0, window_bounds = array<i64: 1, 256>}, {transform_indices = @transform_1, window_bounds = array<i64: 1, 256>}, {pipeline_mode = #tpu.pipeline_mode<synchronous>, transform_indices = @transform_2, window_bounds = array<i64: 40, 32>}, {transform_indices = @transform_3, window_bounds = array<i64: 3, 256>}]} {
    %c0 = arith.constant 0 : index
    %c0_0 = arith.constant 0 : index
    %0 = vector.load %arg1[%c0, %c0_0] : memref<1x256xf32, #tpu.memory_space<vmem>>, vector<1x256xf32>
    %c0_1 = arith.constant 0 : index
    %c0_2 = arith.constant 0 : index
    %1 = vector.load %arg2[%c0_1, %c0_2] : memref<1x256xf32, #tpu.memory_space<vmem>>, vector<1x256xf32>
    %c0_3 = arith.constant 0 : index
    %c0_4 = arith.constant 0 : index
    %2 = vector.load %arg3[%c0_3, %c0_4] : memref<40x32xf32, #tpu.memory_space<vmem>>, vector<40x32xf32>
    %3 = vector.extract_strided_slice %2 {offsets = [0, 0], sizes = [16, 16], strides = [1, 1]} : vector<40x32xf32> to vector<16x16xf32>
    %4 = vector.extract_strided_slice %2 {offsets = [16, 0], sizes = [16, 16], strides = [1, 1]} : vector<40x32xf32> to vector<16x16xf32>
    %5 = vector.extract_strided_slice %2 {offsets = [32, 0], sizes = [2, 16], strides = [1, 1]} : vector<40x32xf32> to vector<2x16xf32>
    %6 = vector.extract_strided_slice %2 {offsets = [34, 0], sizes = [1, 16], strides = [1, 1]} : vector<40x32xf32> to vector<1x16xf32>
    %7 = vector.extract_strided_slice %2 {offsets = [0, 16], sizes = [16, 1], strides = [1, 1]} : vector<40x32xf32> to vector<16x1xf32>
    %8 = vector.extract_strided_slice %2 {offsets = [0, 17], sizes = [16, 1], strides = [1, 1]} : vector<40x32xf32> to vector<16x1xf32>
    %9 = vector.extract_strided_slice %2 {offsets = [0, 18], sizes = [16, 1], strides = [1, 1]} : vector<40x32xf32> to vector<16x1xf32>
    %10 = vector.extract_strided_slice %2 {offsets = [0, 19], sizes = [16, 1], strides = [1, 1]} : vector<40x32xf32> to vector<16x1xf32>
    %11 = vector.extract_strided_slice %2 {offsets = [0, 20], sizes = [2, 1], strides = [1, 1]} : vector<40x32xf32> to vector<2x1xf32>
    %12 = vector.extract_strided_slice %2 {offsets = [0, 21], sizes = [16, 1], strides = [1, 1]} : vector<40x32xf32> to vector<16x1xf32>
    %13 = vector.extract_strided_slice %2 {offsets = [0, 22], sizes = [16, 1], strides = [1, 1]} : vector<40x32xf32> to vector<16x1xf32>
    %14 = vector.extract_strided_slice %2 {offsets = [0, 23], sizes = [1, 1], strides = [1, 1]} : vector<40x32xf32> to vector<1x1xf32>
    %15 = vector.broadcast %7 : vector<16x1xf32> to vector<16x256xf32>
    %16 = vector.broadcast %0 : vector<1x256xf32> to vector<16x256xf32>
    %17 = arith.mulf %15, %16 : vector<16x256xf32>
    %18 = vector.broadcast %9 : vector<16x1xf32> to vector<16x256xf32>
    %19 = arith.addf %17, %18 : vector<16x256xf32>
    %cst = arith.constant 0.000000e+00 : f32
    %20 = vector.broadcast %cst : f32 to vector<16x256xf32>
    %21 = arith.maximumf %19, %20 : vector<16x256xf32>
    %22 = vector.extract_strided_slice %3 {offsets = [0, 0], sizes = [16, 1], strides = [1, 1]} : vector<16x16xf32> to vector<16x1xf32>
    %23 = vector.extract_strided_slice %21 {offsets = [0, 0], sizes = [1, 256], strides = [1, 1]} : vector<16x256xf32> to vector<1x256xf32>
    %24 = vector.broadcast %22 : vector<16x1xf32> to vector<16x256xf32>
    %25 = vector.broadcast %23 : vector<1x256xf32> to vector<16x256xf32>
    %26 = arith.mulf %24, %25 : vector<16x256xf32>
    %27 = vector.extract_strided_slice %3 {offsets = [0, 1], sizes = [16, 1], strides = [1, 1]} : vector<16x16xf32> to vector<16x1xf32>
    %28 = vector.extract_strided_slice %21 {offsets = [1, 0], sizes = [1, 256], strides = [1, 1]} : vector<16x256xf32> to vector<1x256xf32>
    %29 = vector.broadcast %27 : vector<16x1xf32> to vector<16x256xf32>
    %30 = vector.broadcast %28 : vector<1x256xf32> to vector<16x256xf32>
    %31 = arith.mulf %29, %30 : vector<16x256xf32>
    %32 = arith.addf %26, %31 : vector<16x256xf32>
    %33 = vector.extract_strided_slice %3 {offsets = [0, 2], sizes = [16, 1], strides = [1, 1]} : vector<16x16xf32> to vector<16x1xf32>
    %34 = vector.extract_strided_slice %21 {offsets = [2, 0], sizes = [1, 256], strides = [1, 1]} : vector<16x256xf32> to vector<1x256xf32>
    %35 = vector.broadcast %33 : vector<16x1xf32> to vector<16x256xf32>
    %36 = vector.broadcast %34 : vector<1x256xf32> to vector<16x256xf32>
    %37 = arith.mulf %35, %36 : vector<16x256xf32>
    %38 = arith.addf %32, %37 : vector<16x256xf32>
    %39 = vector.extract_strided_slice %3 {offsets = [0, 3], sizes = [16, 1], strides = [1, 1]} : vector<16x16xf32> to vector<16x1xf32>
    %40 = vector.extract_strided_slice %21 {offsets = [3, 0], sizes = [1, 256], strides = [1, 1]} : vector<16x256xf32> to vector<1x256xf32>
    %41 = vector.broadcast %39 : vector<16x1xf32> to vector<16x256xf32>
    %42 = vector.broadcast %40 : vector<1x256xf32> to vector<16x256xf32>
    %43 = arith.mulf %41, %42 : vector<16x256xf32>
    %44 = arith.addf %38, %43 : vector<16x256xf32>
    %45 = vector.extract_strided_slice %3 {offsets = [0, 4], sizes = [16, 1], strides = [1, 1]} : vector<16x16xf32> to vector<16x1xf32>
    %46 = vector.extract_strided_slice %21 {offsets = [4, 0], sizes = [1, 256], strides = [1, 1]} : vector<16x256xf32> to vector<1x256xf32>
    %47 = vector.broadcast %45 : vector<16x1xf32> to vector<16x256xf32>
    %48 = vector.broadcast %46 : vector<1x256xf32> to vector<16x256xf32>
    %49 = arith.mulf %47, %48 : vector<16x256xf32>
    %50 = arith.addf %44, %49 : vector<16x256xf32>
    %51 = vector.extract_strided_slice %3 {offsets = [0, 5], sizes = [16, 1], strides = [1, 1]} : vector<16x16xf32> to vector<16x1xf32>
    %52 = vector.extract_strided_slice %21 {offsets = [5, 0], sizes = [1, 256], strides = [1, 1]} : vector<16x256xf32> to vector<1x256xf32>
    %53 = vector.broadcast %51 : vector<16x1xf32> to vector<16x256xf32>
    %54 = vector.broadcast %52 : vector<1x256xf32> to vector<16x256xf32>
    %55 = arith.mulf %53, %54 : vector<16x256xf32>
    %56 = arith.addf %50, %55 : vector<16x256xf32>
    %57 = vector.extract_strided_slice %3 {offsets = [0, 6], sizes = [16, 1], strides = [1, 1]} : vector<16x16xf32> to vector<16x1xf32>
    %58 = vector.extract_strided_slice %21 {offsets = [6, 0], sizes = [1, 256], strides = [1, 1]} : vector<16x256xf32> to vector<1x256xf32>
    %59 = vector.broadcast %57 : vector<16x1xf32> to vector<16x256xf32>
    %60 = vector.broadcast %58 : vector<1x256xf32> to vector<16x256xf32>
    %61 = arith.mulf %59, %60 : vector<16x256xf32>
    %62 = arith.addf %56, %61 : vector<16x256xf32>
    %63 = vector.extract_strided_slice %3 {offsets = [0, 7], sizes = [16, 1], strides = [1, 1]} : vector<16x16xf32> to vector<16x1xf32>
    %64 = vector.extract_strided_slice %21 {offsets = [7, 0], sizes = [1, 256], strides = [1, 1]} : vector<16x256xf32> to vector<1x256xf32>
    %65 = vector.broadcast %63 : vector<16x1xf32> to vector<16x256xf32>
    %66 = vector.broadcast %64 : vector<1x256xf32> to vector<16x256xf32>
    %67 = arith.mulf %65, %66 : vector<16x256xf32>
    %68 = arith.addf %62, %67 : vector<16x256xf32>
    %69 = vector.extract_strided_slice %3 {offsets = [0, 8], sizes = [16, 1], strides = [1, 1]} : vector<16x16xf32> to vector<16x1xf32>
    %70 = vector.extract_strided_slice %21 {offsets = [8, 0], sizes = [1, 256], strides = [1, 1]} : vector<16x256xf32> to vector<1x256xf32>
    %71 = vector.broadcast %69 : vector<16x1xf32> to vector<16x256xf32>
    %72 = vector.broadcast %70 : vector<1x256xf32> to vector<16x256xf32>
    %73 = arith.mulf %71, %72 : vector<16x256xf32>
    %74 = arith.addf %68, %73 : vector<16x256xf32>
    %75 = vector.extract_strided_slice %3 {offsets = [0, 9], sizes = [16, 1], strides = [1, 1]} : vector<16x16xf32> to vector<16x1xf32>
    %76 = vector.extract_strided_slice %21 {offsets = [9, 0], sizes = [1, 256], strides = [1, 1]} : vector<16x256xf32> to vector<1x256xf32>
    %77 = vector.broadcast %75 : vector<16x1xf32> to vector<16x256xf32>
    %78 = vector.broadcast %76 : vector<1x256xf32> to vector<16x256xf32>
    %79 = arith.mulf %77, %78 : vector<16x256xf32>
    %80 = arith.addf %74, %79 : vector<16x256xf32>
    %81 = vector.extract_strided_slice %3 {offsets = [0, 10], sizes = [16, 1], strides = [1, 1]} : vector<16x16xf32> to vector<16x1xf32>
    %82 = vector.extract_strided_slice %21 {offsets = [10, 0], sizes = [1, 256], strides = [1, 1]} : vector<16x256xf32> to vector<1x256xf32>
    %83 = vector.broadcast %81 : vector<16x1xf32> to vector<16x256xf32>
    %84 = vector.broadcast %82 : vector<1x256xf32> to vector<16x256xf32>
    %85 = arith.mulf %83, %84 : vector<16x256xf32>
    %86 = arith.addf %80, %85 : vector<16x256xf32>
    %87 = vector.extract_strided_slice %3 {offsets = [0, 11], sizes = [16, 1], strides = [1, 1]} : vector<16x16xf32> to vector<16x1xf32>
    %88 = vector.extract_strided_slice %21 {offsets = [11, 0], sizes = [1, 256], strides = [1, 1]} : vector<16x256xf32> to vector<1x256xf32>
    %89 = vector.broadcast %87 : vector<16x1xf32> to vector<16x256xf32>
    %90 = vector.broadcast %88 : vector<1x256xf32> to vector<16x256xf32>
    %91 = arith.mulf %89, %90 : vector<16x256xf32>
    %92 = arith.addf %86, %91 : vector<16x256xf32>
    %93 = vector.extract_strided_slice %3 {offsets = [0, 12], sizes = [16, 1], strides = [1, 1]} : vector<16x16xf32> to vector<16x1xf32>
    %94 = vector.extract_strided_slice %21 {offsets = [12, 0], sizes = [1, 256], strides = [1, 1]} : vector<16x256xf32> to vector<1x256xf32>
    %95 = vector.broadcast %93 : vector<16x1xf32> to vector<16x256xf32>
    %96 = vector.broadcast %94 : vector<1x256xf32> to vector<16x256xf32>
    %97 = arith.mulf %95, %96 : vector<16x256xf32>
    %98 = arith.addf %92, %97 : vector<16x256xf32>
    %99 = vector.extract_strided_slice %3 {offsets = [0, 13], sizes = [16, 1], strides = [1, 1]} : vector<16x16xf32> to vector<16x1xf32>
    %100 = vector.extract_strided_slice %21 {offsets = [13, 0], sizes = [1, 256], strides = [1, 1]} : vector<16x256xf32> to vector<1x256xf32>
    %101 = vector.broadcast %99 : vector<16x1xf32> to vector<16x256xf32>
    %102 = vector.broadcast %100 : vector<1x256xf32> to vector<16x256xf32>
    %103 = arith.mulf %101, %102 : vector<16x256xf32>
    %104 = arith.addf %98, %103 : vector<16x256xf32>
    %105 = vector.extract_strided_slice %3 {offsets = [0, 14], sizes = [16, 1], strides = [1, 1]} : vector<16x16xf32> to vector<16x1xf32>
    %106 = vector.extract_strided_slice %21 {offsets = [14, 0], sizes = [1, 256], strides = [1, 1]} : vector<16x256xf32> to vector<1x256xf32>
    %107 = vector.broadcast %105 : vector<16x1xf32> to vector<16x256xf32>
    %108 = vector.broadcast %106 : vector<1x256xf32> to vector<16x256xf32>
    %109 = arith.mulf %107, %108 : vector<16x256xf32>
    %110 = arith.addf %104, %109 : vector<16x256xf32>
    %111 = vector.extract_strided_slice %3 {offsets = [0, 15], sizes = [16, 1], strides = [1, 1]} : vector<16x16xf32> to vector<16x1xf32>
    %112 = vector.extract_strided_slice %21 {offsets = [15, 0], sizes = [1, 256], strides = [1, 1]} : vector<16x256xf32> to vector<1x256xf32>
    %113 = vector.broadcast %111 : vector<16x1xf32> to vector<16x256xf32>
    %114 = vector.broadcast %112 : vector<1x256xf32> to vector<16x256xf32>
    %115 = arith.mulf %113, %114 : vector<16x256xf32>
    %116 = arith.addf %110, %115 : vector<16x256xf32>
    %117 = vector.broadcast %10 : vector<16x1xf32> to vector<16x256xf32>
    %118 = arith.addf %116, %117 : vector<16x256xf32>
    %cst_5 = arith.constant 0.000000e+00 : f32
    %119 = vector.broadcast %cst_5 : f32 to vector<16x256xf32>
    %120 = arith.maximumf %118, %119 : vector<16x256xf32>
    %121 = vector.extract_strided_slice %5 {offsets = [0, 0], sizes = [2, 1], strides = [1, 1]} : vector<2x16xf32> to vector<2x1xf32>
    %122 = vector.extract_strided_slice %120 {offsets = [0, 0], sizes = [1, 256], strides = [1, 1]} : vector<16x256xf32> to vector<1x256xf32>
    %123 = vector.broadcast %121 : vector<2x1xf32> to vector<2x256xf32>
    %124 = vector.broadcast %122 : vector<1x256xf32> to vector<2x256xf32>
    %125 = arith.mulf %123, %124 : vector<2x256xf32>
    %126 = vector.extract_strided_slice %5 {offsets = [0, 1], sizes = [2, 1], strides = [1, 1]} : vector<2x16xf32> to vector<2x1xf32>
    %127 = vector.extract_strided_slice %120 {offsets = [1, 0], sizes = [1, 256], strides = [1, 1]} : vector<16x256xf32> to vector<1x256xf32>
    %128 = vector.broadcast %126 : vector<2x1xf32> to vector<2x256xf32>
    %129 = vector.broadcast %127 : vector<1x256xf32> to vector<2x256xf32>
    %130 = arith.mulf %128, %129 : vector<2x256xf32>
    %131 = arith.addf %125, %130 : vector<2x256xf32>
    %132 = vector.extract_strided_slice %5 {offsets = [0, 2], sizes = [2, 1], strides = [1, 1]} : vector<2x16xf32> to vector<2x1xf32>
    %133 = vector.extract_strided_slice %120 {offsets = [2, 0], sizes = [1, 256], strides = [1, 1]} : vector<16x256xf32> to vector<1x256xf32>
    %134 = vector.broadcast %132 : vector<2x1xf32> to vector<2x256xf32>
    %135 = vector.broadcast %133 : vector<1x256xf32> to vector<2x256xf32>
    %136 = arith.mulf %134, %135 : vector<2x256xf32>
    %137 = arith.addf %131, %136 : vector<2x256xf32>
    %138 = vector.extract_strided_slice %5 {offsets = [0, 3], sizes = [2, 1], strides = [1, 1]} : vector<2x16xf32> to vector<2x1xf32>
    %139 = vector.extract_strided_slice %120 {offsets = [3, 0], sizes = [1, 256], strides = [1, 1]} : vector<16x256xf32> to vector<1x256xf32>
    %140 = vector.broadcast %138 : vector<2x1xf32> to vector<2x256xf32>
    %141 = vector.broadcast %139 : vector<1x256xf32> to vector<2x256xf32>
    %142 = arith.mulf %140, %141 : vector<2x256xf32>
    %143 = arith.addf %137, %142 : vector<2x256xf32>
    %144 = vector.extract_strided_slice %5 {offsets = [0, 4], sizes = [2, 1], strides = [1, 1]} : vector<2x16xf32> to vector<2x1xf32>
    %145 = vector.extract_strided_slice %120 {offsets = [4, 0], sizes = [1, 256], strides = [1, 1]} : vector<16x256xf32> to vector<1x256xf32>
    %146 = vector.broadcast %144 : vector<2x1xf32> to vector<2x256xf32>
    %147 = vector.broadcast %145 : vector<1x256xf32> to vector<2x256xf32>
    %148 = arith.mulf %146, %147 : vector<2x256xf32>
    %149 = arith.addf %143, %148 : vector<2x256xf32>
    %150 = vector.extract_strided_slice %5 {offsets = [0, 5], sizes = [2, 1], strides = [1, 1]} : vector<2x16xf32> to vector<2x1xf32>
    %151 = vector.extract_strided_slice %120 {offsets = [5, 0], sizes = [1, 256], strides = [1, 1]} : vector<16x256xf32> to vector<1x256xf32>
    %152 = vector.broadcast %150 : vector<2x1xf32> to vector<2x256xf32>
    %153 = vector.broadcast %151 : vector<1x256xf32> to vector<2x256xf32>
    %154 = arith.mulf %152, %153 : vector<2x256xf32>
    %155 = arith.addf %149, %154 : vector<2x256xf32>
    %156 = vector.extract_strided_slice %5 {offsets = [0, 6], sizes = [2, 1], strides = [1, 1]} : vector<2x16xf32> to vector<2x1xf32>
    %157 = vector.extract_strided_slice %120 {offsets = [6, 0], sizes = [1, 256], strides = [1, 1]} : vector<16x256xf32> to vector<1x256xf32>
    %158 = vector.broadcast %156 : vector<2x1xf32> to vector<2x256xf32>
    %159 = vector.broadcast %157 : vector<1x256xf32> to vector<2x256xf32>
    %160 = arith.mulf %158, %159 : vector<2x256xf32>
    %161 = arith.addf %155, %160 : vector<2x256xf32>
    %162 = vector.extract_strided_slice %5 {offsets = [0, 7], sizes = [2, 1], strides = [1, 1]} : vector<2x16xf32> to vector<2x1xf32>
    %163 = vector.extract_strided_slice %120 {offsets = [7, 0], sizes = [1, 256], strides = [1, 1]} : vector<16x256xf32> to vector<1x256xf32>
    %164 = vector.broadcast %162 : vector<2x1xf32> to vector<2x256xf32>
    %165 = vector.broadcast %163 : vector<1x256xf32> to vector<2x256xf32>
    %166 = arith.mulf %164, %165 : vector<2x256xf32>
    %167 = arith.addf %161, %166 : vector<2x256xf32>
    %168 = vector.extract_strided_slice %5 {offsets = [0, 8], sizes = [2, 1], strides = [1, 1]} : vector<2x16xf32> to vector<2x1xf32>
    %169 = vector.extract_strided_slice %120 {offsets = [8, 0], sizes = [1, 256], strides = [1, 1]} : vector<16x256xf32> to vector<1x256xf32>
    %170 = vector.broadcast %168 : vector<2x1xf32> to vector<2x256xf32>
    %171 = vector.broadcast %169 : vector<1x256xf32> to vector<2x256xf32>
    %172 = arith.mulf %170, %171 : vector<2x256xf32>
    %173 = arith.addf %167, %172 : vector<2x256xf32>
    %174 = vector.extract_strided_slice %5 {offsets = [0, 9], sizes = [2, 1], strides = [1, 1]} : vector<2x16xf32> to vector<2x1xf32>
    %175 = vector.extract_strided_slice %120 {offsets = [9, 0], sizes = [1, 256], strides = [1, 1]} : vector<16x256xf32> to vector<1x256xf32>
    %176 = vector.broadcast %174 : vector<2x1xf32> to vector<2x256xf32>
    %177 = vector.broadcast %175 : vector<1x256xf32> to vector<2x256xf32>
    %178 = arith.mulf %176, %177 : vector<2x256xf32>
    %179 = arith.addf %173, %178 : vector<2x256xf32>
    %180 = vector.extract_strided_slice %5 {offsets = [0, 10], sizes = [2, 1], strides = [1, 1]} : vector<2x16xf32> to vector<2x1xf32>
    %181 = vector.extract_strided_slice %120 {offsets = [10, 0], sizes = [1, 256], strides = [1, 1]} : vector<16x256xf32> to vector<1x256xf32>
    %182 = vector.broadcast %180 : vector<2x1xf32> to vector<2x256xf32>
    %183 = vector.broadcast %181 : vector<1x256xf32> to vector<2x256xf32>
    %184 = arith.mulf %182, %183 : vector<2x256xf32>
    %185 = arith.addf %179, %184 : vector<2x256xf32>
    %186 = vector.extract_strided_slice %5 {offsets = [0, 11], sizes = [2, 1], strides = [1, 1]} : vector<2x16xf32> to vector<2x1xf32>
    %187 = vector.extract_strided_slice %120 {offsets = [11, 0], sizes = [1, 256], strides = [1, 1]} : vector<16x256xf32> to vector<1x256xf32>
    %188 = vector.broadcast %186 : vector<2x1xf32> to vector<2x256xf32>
    %189 = vector.broadcast %187 : vector<1x256xf32> to vector<2x256xf32>
    %190 = arith.mulf %188, %189 : vector<2x256xf32>
    %191 = arith.addf %185, %190 : vector<2x256xf32>
    %192 = vector.extract_strided_slice %5 {offsets = [0, 12], sizes = [2, 1], strides = [1, 1]} : vector<2x16xf32> to vector<2x1xf32>
    %193 = vector.extract_strided_slice %120 {offsets = [12, 0], sizes = [1, 256], strides = [1, 1]} : vector<16x256xf32> to vector<1x256xf32>
    %194 = vector.broadcast %192 : vector<2x1xf32> to vector<2x256xf32>
    %195 = vector.broadcast %193 : vector<1x256xf32> to vector<2x256xf32>
    %196 = arith.mulf %194, %195 : vector<2x256xf32>
    %197 = arith.addf %191, %196 : vector<2x256xf32>
    %198 = vector.extract_strided_slice %5 {offsets = [0, 13], sizes = [2, 1], strides = [1, 1]} : vector<2x16xf32> to vector<2x1xf32>
    %199 = vector.extract_strided_slice %120 {offsets = [13, 0], sizes = [1, 256], strides = [1, 1]} : vector<16x256xf32> to vector<1x256xf32>
    %200 = vector.broadcast %198 : vector<2x1xf32> to vector<2x256xf32>
    %201 = vector.broadcast %199 : vector<1x256xf32> to vector<2x256xf32>
    %202 = arith.mulf %200, %201 : vector<2x256xf32>
    %203 = arith.addf %197, %202 : vector<2x256xf32>
    %204 = vector.extract_strided_slice %5 {offsets = [0, 14], sizes = [2, 1], strides = [1, 1]} : vector<2x16xf32> to vector<2x1xf32>
    %205 = vector.extract_strided_slice %120 {offsets = [14, 0], sizes = [1, 256], strides = [1, 1]} : vector<16x256xf32> to vector<1x256xf32>
    %206 = vector.broadcast %204 : vector<2x1xf32> to vector<2x256xf32>
    %207 = vector.broadcast %205 : vector<1x256xf32> to vector<2x256xf32>
    %208 = arith.mulf %206, %207 : vector<2x256xf32>
    %209 = arith.addf %203, %208 : vector<2x256xf32>
    %210 = vector.extract_strided_slice %5 {offsets = [0, 15], sizes = [2, 1], strides = [1, 1]} : vector<2x16xf32> to vector<2x1xf32>
    %211 = vector.extract_strided_slice %120 {offsets = [15, 0], sizes = [1, 256], strides = [1, 1]} : vector<16x256xf32> to vector<1x256xf32>
    %212 = vector.broadcast %210 : vector<2x1xf32> to vector<2x256xf32>
    %213 = vector.broadcast %211 : vector<1x256xf32> to vector<2x256xf32>
    %214 = arith.mulf %212, %213 : vector<2x256xf32>
    %215 = arith.addf %209, %214 : vector<2x256xf32>
    %216 = vector.broadcast %11 : vector<2x1xf32> to vector<2x256xf32>
    %217 = arith.addf %215, %216 : vector<2x256xf32>
    %218 = vector.extract_strided_slice %217 {offsets = [0, 0], sizes = [1, 256], strides = [1, 1]} : vector<2x256xf32> to vector<1x256xf32>
    %219 = vector.extract_strided_slice %217 {offsets = [1, 0], sizes = [1, 256], strides = [1, 1]} : vector<2x256xf32> to vector<1x256xf32>
    %cst_6 = arith.constant 5.000000e-01 : f32
    %220 = vector.broadcast %cst_6 : f32 to vector<1x256xf32>
    %221 = arith.mulf %220, %219 : vector<1x256xf32>
    %222 = math.exp %221 : vector<1x256xf32>
    %223 = arith.mulf %1, %222 : vector<1x256xf32>
    %224 = arith.addf %218, %223 : vector<1x256xf32>
    %225 = vector.broadcast %8 : vector<16x1xf32> to vector<16x256xf32>
    %226 = vector.broadcast %224 : vector<1x256xf32> to vector<16x256xf32>
    %227 = arith.mulf %225, %226 : vector<16x256xf32>
    %228 = vector.broadcast %12 : vector<16x1xf32> to vector<16x256xf32>
    %229 = arith.addf %227, %228 : vector<16x256xf32>
    %cst_7 = arith.constant 0.000000e+00 : f32
    %230 = vector.broadcast %cst_7 : f32 to vector<16x256xf32>
    %231 = arith.maximumf %229, %230 : vector<16x256xf32>
    %232 = vector.extract_strided_slice %4 {offsets = [0, 0], sizes = [16, 1], strides = [1, 1]} : vector<16x16xf32> to vector<16x1xf32>
    %233 = vector.extract_strided_slice %231 {offsets = [0, 0], sizes = [1, 256], strides = [1, 1]} : vector<16x256xf32> to vector<1x256xf32>
    %234 = vector.broadcast %232 : vector<16x1xf32> to vector<16x256xf32>
    %235 = vector.broadcast %233 : vector<1x256xf32> to vector<16x256xf32>
    %236 = arith.mulf %234, %235 : vector<16x256xf32>
    %237 = vector.extract_strided_slice %4 {offsets = [0, 1], sizes = [16, 1], strides = [1, 1]} : vector<16x16xf32> to vector<16x1xf32>
    %238 = vector.extract_strided_slice %231 {offsets = [1, 0], sizes = [1, 256], strides = [1, 1]} : vector<16x256xf32> to vector<1x256xf32>
    %239 = vector.broadcast %237 : vector<16x1xf32> to vector<16x256xf32>
    %240 = vector.broadcast %238 : vector<1x256xf32> to vector<16x256xf32>
    %241 = arith.mulf %239, %240 : vector<16x256xf32>
    %242 = arith.addf %236, %241 : vector<16x256xf32>
    %243 = vector.extract_strided_slice %4 {offsets = [0, 2], sizes = [16, 1], strides = [1, 1]} : vector<16x16xf32> to vector<16x1xf32>
    %244 = vector.extract_strided_slice %231 {offsets = [2, 0], sizes = [1, 256], strides = [1, 1]} : vector<16x256xf32> to vector<1x256xf32>
    %245 = vector.broadcast %243 : vector<16x1xf32> to vector<16x256xf32>
    %246 = vector.broadcast %244 : vector<1x256xf32> to vector<16x256xf32>
    %247 = arith.mulf %245, %246 : vector<16x256xf32>
    %248 = arith.addf %242, %247 : vector<16x256xf32>
    %249 = vector.extract_strided_slice %4 {offsets = [0, 3], sizes = [16, 1], strides = [1, 1]} : vector<16x16xf32> to vector<16x1xf32>
    %250 = vector.extract_strided_slice %231 {offsets = [3, 0], sizes = [1, 256], strides = [1, 1]} : vector<16x256xf32> to vector<1x256xf32>
    %251 = vector.broadcast %249 : vector<16x1xf32> to vector<16x256xf32>
    %252 = vector.broadcast %250 : vector<1x256xf32> to vector<16x256xf32>
    %253 = arith.mulf %251, %252 : vector<16x256xf32>
    %254 = arith.addf %248, %253 : vector<16x256xf32>
    %255 = vector.extract_strided_slice %4 {offsets = [0, 4], sizes = [16, 1], strides = [1, 1]} : vector<16x16xf32> to vector<16x1xf32>
    %256 = vector.extract_strided_slice %231 {offsets = [4, 0], sizes = [1, 256], strides = [1, 1]} : vector<16x256xf32> to vector<1x256xf32>
    %257 = vector.broadcast %255 : vector<16x1xf32> to vector<16x256xf32>
    %258 = vector.broadcast %256 : vector<1x256xf32> to vector<16x256xf32>
    %259 = arith.mulf %257, %258 : vector<16x256xf32>
    %260 = arith.addf %254, %259 : vector<16x256xf32>
    %261 = vector.extract_strided_slice %4 {offsets = [0, 5], sizes = [16, 1], strides = [1, 1]} : vector<16x16xf32> to vector<16x1xf32>
    %262 = vector.extract_strided_slice %231 {offsets = [5, 0], sizes = [1, 256], strides = [1, 1]} : vector<16x256xf32> to vector<1x256xf32>
    %263 = vector.broadcast %261 : vector<16x1xf32> to vector<16x256xf32>
    %264 = vector.broadcast %262 : vector<1x256xf32> to vector<16x256xf32>
    %265 = arith.mulf %263, %264 : vector<16x256xf32>
    %266 = arith.addf %260, %265 : vector<16x256xf32>
    %267 = vector.extract_strided_slice %4 {offsets = [0, 6], sizes = [16, 1], strides = [1, 1]} : vector<16x16xf32> to vector<16x1xf32>
    %268 = vector.extract_strided_slice %231 {offsets = [6, 0], sizes = [1, 256], strides = [1, 1]} : vector<16x256xf32> to vector<1x256xf32>
    %269 = vector.broadcast %267 : vector<16x1xf32> to vector<16x256xf32>
    %270 = vector.broadcast %268 : vector<1x256xf32> to vector<16x256xf32>
    %271 = arith.mulf %269, %270 : vector<16x256xf32>
    %272 = arith.addf %266, %271 : vector<16x256xf32>
    %273 = vector.extract_strided_slice %4 {offsets = [0, 7], sizes = [16, 1], strides = [1, 1]} : vector<16x16xf32> to vector<16x1xf32>
    %274 = vector.extract_strided_slice %231 {offsets = [7, 0], sizes = [1, 256], strides = [1, 1]} : vector<16x256xf32> to vector<1x256xf32>
    %275 = vector.broadcast %273 : vector<16x1xf32> to vector<16x256xf32>
    %276 = vector.broadcast %274 : vector<1x256xf32> to vector<16x256xf32>
    %277 = arith.mulf %275, %276 : vector<16x256xf32>
    %278 = arith.addf %272, %277 : vector<16x256xf32>
    %279 = vector.extract_strided_slice %4 {offsets = [0, 8], sizes = [16, 1], strides = [1, 1]} : vector<16x16xf32> to vector<16x1xf32>
    %280 = vector.extract_strided_slice %231 {offsets = [8, 0], sizes = [1, 256], strides = [1, 1]} : vector<16x256xf32> to vector<1x256xf32>
    %281 = vector.broadcast %279 : vector<16x1xf32> to vector<16x256xf32>
    %282 = vector.broadcast %280 : vector<1x256xf32> to vector<16x256xf32>
    %283 = arith.mulf %281, %282 : vector<16x256xf32>
    %284 = arith.addf %278, %283 : vector<16x256xf32>
    %285 = vector.extract_strided_slice %4 {offsets = [0, 9], sizes = [16, 1], strides = [1, 1]} : vector<16x16xf32> to vector<16x1xf32>
    %286 = vector.extract_strided_slice %231 {offsets = [9, 0], sizes = [1, 256], strides = [1, 1]} : vector<16x256xf32> to vector<1x256xf32>
    %287 = vector.broadcast %285 : vector<16x1xf32> to vector<16x256xf32>
    %288 = vector.broadcast %286 : vector<1x256xf32> to vector<16x256xf32>
    %289 = arith.mulf %287, %288 : vector<16x256xf32>
    %290 = arith.addf %284, %289 : vector<16x256xf32>
    %291 = vector.extract_strided_slice %4 {offsets = [0, 10], sizes = [16, 1], strides = [1, 1]} : vector<16x16xf32> to vector<16x1xf32>
    %292 = vector.extract_strided_slice %231 {offsets = [10, 0], sizes = [1, 256], strides = [1, 1]} : vector<16x256xf32> to vector<1x256xf32>
    %293 = vector.broadcast %291 : vector<16x1xf32> to vector<16x256xf32>
    %294 = vector.broadcast %292 : vector<1x256xf32> to vector<16x256xf32>
    %295 = arith.mulf %293, %294 : vector<16x256xf32>
    %296 = arith.addf %290, %295 : vector<16x256xf32>
    %297 = vector.extract_strided_slice %4 {offsets = [0, 11], sizes = [16, 1], strides = [1, 1]} : vector<16x16xf32> to vector<16x1xf32>
    %298 = vector.extract_strided_slice %231 {offsets = [11, 0], sizes = [1, 256], strides = [1, 1]} : vector<16x256xf32> to vector<1x256xf32>
    %299 = vector.broadcast %297 : vector<16x1xf32> to vector<16x256xf32>
    %300 = vector.broadcast %298 : vector<1x256xf32> to vector<16x256xf32>
    %301 = arith.mulf %299, %300 : vector<16x256xf32>
    %302 = arith.addf %296, %301 : vector<16x256xf32>
    %303 = vector.extract_strided_slice %4 {offsets = [0, 12], sizes = [16, 1], strides = [1, 1]} : vector<16x16xf32> to vector<16x1xf32>
    %304 = vector.extract_strided_slice %231 {offsets = [12, 0], sizes = [1, 256], strides = [1, 1]} : vector<16x256xf32> to vector<1x256xf32>
    %305 = vector.broadcast %303 : vector<16x1xf32> to vector<16x256xf32>
    %306 = vector.broadcast %304 : vector<1x256xf32> to vector<16x256xf32>
    %307 = arith.mulf %305, %306 : vector<16x256xf32>
    %308 = arith.addf %302, %307 : vector<16x256xf32>
    %309 = vector.extract_strided_slice %4 {offsets = [0, 13], sizes = [16, 1], strides = [1, 1]} : vector<16x16xf32> to vector<16x1xf32>
    %310 = vector.extract_strided_slice %231 {offsets = [13, 0], sizes = [1, 256], strides = [1, 1]} : vector<16x256xf32> to vector<1x256xf32>
    %311 = vector.broadcast %309 : vector<16x1xf32> to vector<16x256xf32>
    %312 = vector.broadcast %310 : vector<1x256xf32> to vector<16x256xf32>
    %313 = arith.mulf %311, %312 : vector<16x256xf32>
    %314 = arith.addf %308, %313 : vector<16x256xf32>
    %315 = vector.extract_strided_slice %4 {offsets = [0, 14], sizes = [16, 1], strides = [1, 1]} : vector<16x16xf32> to vector<16x1xf32>
    %316 = vector.extract_strided_slice %231 {offsets = [14, 0], sizes = [1, 256], strides = [1, 1]} : vector<16x256xf32> to vector<1x256xf32>
    %317 = vector.broadcast %315 : vector<16x1xf32> to vector<16x256xf32>
    %318 = vector.broadcast %316 : vector<1x256xf32> to vector<16x256xf32>
    %319 = arith.mulf %317, %318 : vector<16x256xf32>
    %320 = arith.addf %314, %319 : vector<16x256xf32>
    %321 = vector.extract_strided_slice %4 {offsets = [0, 15], sizes = [16, 1], strides = [1, 1]} : vector<16x16xf32> to vector<16x1xf32>
    %322 = vector.extract_strided_slice %231 {offsets = [15, 0], sizes = [1, 256], strides = [1, 1]} : vector<16x256xf32> to vector<1x256xf32>
    %323 = vector.broadcast %321 : vector<16x1xf32> to vector<16x256xf32>
    %324 = vector.broadcast %322 : vector<1x256xf32> to vector<16x256xf32>
    %325 = arith.mulf %323, %324 : vector<16x256xf32>
    %326 = arith.addf %320, %325 : vector<16x256xf32>
    %327 = vector.broadcast %13 : vector<16x1xf32> to vector<16x256xf32>
    %328 = arith.addf %326, %327 : vector<16x256xf32>
    %cst_8 = arith.constant 0.000000e+00 : f32
    %329 = vector.broadcast %cst_8 : f32 to vector<16x256xf32>
    %330 = arith.maximumf %328, %329 : vector<16x256xf32>
    %331 = vector.extract_strided_slice %6 {offsets = [0, 0], sizes = [1, 1], strides = [1, 1]} : vector<1x16xf32> to vector<1x1xf32>
    %332 = vector.extract_strided_slice %330 {offsets = [0, 0], sizes = [1, 256], strides = [1, 1]} : vector<16x256xf32> to vector<1x256xf32>
    %333 = vector.broadcast %331 : vector<1x1xf32> to vector<1x256xf32>
    %334 = arith.mulf %333, %332 : vector<1x256xf32>
    %335 = vector.extract_strided_slice %6 {offsets = [0, 1], sizes = [1, 1], strides = [1, 1]} : vector<1x16xf32> to vector<1x1xf32>
    %336 = vector.extract_strided_slice %330 {offsets = [1, 0], sizes = [1, 256], strides = [1, 1]} : vector<16x256xf32> to vector<1x256xf32>
    %337 = vector.broadcast %335 : vector<1x1xf32> to vector<1x256xf32>
    %338 = arith.mulf %337, %336 : vector<1x256xf32>
    %339 = arith.addf %334, %338 : vector<1x256xf32>
    %340 = vector.extract_strided_slice %6 {offsets = [0, 2], sizes = [1, 1], strides = [1, 1]} : vector<1x16xf32> to vector<1x1xf32>
    %341 = vector.extract_strided_slice %330 {offsets = [2, 0], sizes = [1, 256], strides = [1, 1]} : vector<16x256xf32> to vector<1x256xf32>
    %342 = vector.broadcast %340 : vector<1x1xf32> to vector<1x256xf32>
    %343 = arith.mulf %342, %341 : vector<1x256xf32>
    %344 = arith.addf %339, %343 : vector<1x256xf32>
    %345 = vector.extract_strided_slice %6 {offsets = [0, 3], sizes = [1, 1], strides = [1, 1]} : vector<1x16xf32> to vector<1x1xf32>
    %346 = vector.extract_strided_slice %330 {offsets = [3, 0], sizes = [1, 256], strides = [1, 1]} : vector<16x256xf32> to vector<1x256xf32>
    %347 = vector.broadcast %345 : vector<1x1xf32> to vector<1x256xf32>
    %348 = arith.mulf %347, %346 : vector<1x256xf32>
    %349 = arith.addf %344, %348 : vector<1x256xf32>
    %350 = vector.extract_strided_slice %6 {offsets = [0, 4], sizes = [1, 1], strides = [1, 1]} : vector<1x16xf32> to vector<1x1xf32>
    %351 = vector.extract_strided_slice %330 {offsets = [4, 0], sizes = [1, 256], strides = [1, 1]} : vector<16x256xf32> to vector<1x256xf32>
    %352 = vector.broadcast %350 : vector<1x1xf32> to vector<1x256xf32>
    %353 = arith.mulf %352, %351 : vector<1x256xf32>
    %354 = arith.addf %349, %353 : vector<1x256xf32>
    %355 = vector.extract_strided_slice %6 {offsets = [0, 5], sizes = [1, 1], strides = [1, 1]} : vector<1x16xf32> to vector<1x1xf32>
    %356 = vector.extract_strided_slice %330 {offsets = [5, 0], sizes = [1, 256], strides = [1, 1]} : vector<16x256xf32> to vector<1x256xf32>
    %357 = vector.broadcast %355 : vector<1x1xf32> to vector<1x256xf32>
    %358 = arith.mulf %357, %356 : vector<1x256xf32>
    %359 = arith.addf %354, %358 : vector<1x256xf32>
    %360 = vector.extract_strided_slice %6 {offsets = [0, 6], sizes = [1, 1], strides = [1, 1]} : vector<1x16xf32> to vector<1x1xf32>
    %361 = vector.extract_strided_slice %330 {offsets = [6, 0], sizes = [1, 256], strides = [1, 1]} : vector<16x256xf32> to vector<1x256xf32>
    %362 = vector.broadcast %360 : vector<1x1xf32> to vector<1x256xf32>
    %363 = arith.mulf %362, %361 : vector<1x256xf32>
    %364 = arith.addf %359, %363 : vector<1x256xf32>
    %365 = vector.extract_strided_slice %6 {offsets = [0, 7], sizes = [1, 1], strides = [1, 1]} : vector<1x16xf32> to vector<1x1xf32>
    %366 = vector.extract_strided_slice %330 {offsets = [7, 0], sizes = [1, 256], strides = [1, 1]} : vector<16x256xf32> to vector<1x256xf32>
    %367 = vector.broadcast %365 : vector<1x1xf32> to vector<1x256xf32>
    %368 = arith.mulf %367, %366 : vector<1x256xf32>
    %369 = arith.addf %364, %368 : vector<1x256xf32>
    %370 = vector.extract_strided_slice %6 {offsets = [0, 8], sizes = [1, 1], strides = [1, 1]} : vector<1x16xf32> to vector<1x1xf32>
    %371 = vector.extract_strided_slice %330 {offsets = [8, 0], sizes = [1, 256], strides = [1, 1]} : vector<16x256xf32> to vector<1x256xf32>
    %372 = vector.broadcast %370 : vector<1x1xf32> to vector<1x256xf32>
    %373 = arith.mulf %372, %371 : vector<1x256xf32>
    %374 = arith.addf %369, %373 : vector<1x256xf32>
    %375 = vector.extract_strided_slice %6 {offsets = [0, 9], sizes = [1, 1], strides = [1, 1]} : vector<1x16xf32> to vector<1x1xf32>
    %376 = vector.extract_strided_slice %330 {offsets = [9, 0], sizes = [1, 256], strides = [1, 1]} : vector<16x256xf32> to vector<1x256xf32>
    %377 = vector.broadcast %375 : vector<1x1xf32> to vector<1x256xf32>
    %378 = arith.mulf %377, %376 : vector<1x256xf32>
    %379 = arith.addf %374, %378 : vector<1x256xf32>
    %380 = vector.extract_strided_slice %6 {offsets = [0, 10], sizes = [1, 1], strides = [1, 1]} : vector<1x16xf32> to vector<1x1xf32>
    %381 = vector.extract_strided_slice %330 {offsets = [10, 0], sizes = [1, 256], strides = [1, 1]} : vector<16x256xf32> to vector<1x256xf32>
    %382 = vector.broadcast %380 : vector<1x1xf32> to vector<1x256xf32>
    %383 = arith.mulf %382, %381 : vector<1x256xf32>
    %384 = arith.addf %379, %383 : vector<1x256xf32>
    %385 = vector.extract_strided_slice %6 {offsets = [0, 11], sizes = [1, 1], strides = [1, 1]} : vector<1x16xf32> to vector<1x1xf32>
    %386 = vector.extract_strided_slice %330 {offsets = [11, 0], sizes = [1, 256], strides = [1, 1]} : vector<16x256xf32> to vector<1x256xf32>
    %387 = vector.broadcast %385 : vector<1x1xf32> to vector<1x256xf32>
    %388 = arith.mulf %387, %386 : vector<1x256xf32>
    %389 = arith.addf %384, %388 : vector<1x256xf32>
    %390 = vector.extract_strided_slice %6 {offsets = [0, 12], sizes = [1, 1], strides = [1, 1]} : vector<1x16xf32> to vector<1x1xf32>
    %391 = vector.extract_strided_slice %330 {offsets = [12, 0], sizes = [1, 256], strides = [1, 1]} : vector<16x256xf32> to vector<1x256xf32>
    %392 = vector.broadcast %390 : vector<1x1xf32> to vector<1x256xf32>
    %393 = arith.mulf %392, %391 : vector<1x256xf32>
    %394 = arith.addf %389, %393 : vector<1x256xf32>
    %395 = vector.extract_strided_slice %6 {offsets = [0, 13], sizes = [1, 1], strides = [1, 1]} : vector<1x16xf32> to vector<1x1xf32>
    %396 = vector.extract_strided_slice %330 {offsets = [13, 0], sizes = [1, 256], strides = [1, 1]} : vector<16x256xf32> to vector<1x256xf32>
    %397 = vector.broadcast %395 : vector<1x1xf32> to vector<1x256xf32>
    %398 = arith.mulf %397, %396 : vector<1x256xf32>
    %399 = arith.addf %394, %398 : vector<1x256xf32>
    %400 = vector.extract_strided_slice %6 {offsets = [0, 14], sizes = [1, 1], strides = [1, 1]} : vector<1x16xf32> to vector<1x1xf32>
    %401 = vector.extract_strided_slice %330 {offsets = [14, 0], sizes = [1, 256], strides = [1, 1]} : vector<16x256xf32> to vector<1x256xf32>
    %402 = vector.broadcast %400 : vector<1x1xf32> to vector<1x256xf32>
    %403 = arith.mulf %402, %401 : vector<1x256xf32>
    %404 = arith.addf %399, %403 : vector<1x256xf32>
    %405 = vector.extract_strided_slice %6 {offsets = [0, 15], sizes = [1, 1], strides = [1, 1]} : vector<1x16xf32> to vector<1x1xf32>
    %406 = vector.extract_strided_slice %330 {offsets = [15, 0], sizes = [1, 256], strides = [1, 1]} : vector<16x256xf32> to vector<1x256xf32>
    %407 = vector.broadcast %405 : vector<1x1xf32> to vector<1x256xf32>
    %408 = arith.mulf %407, %406 : vector<1x256xf32>
    %409 = arith.addf %404, %408 : vector<1x256xf32>
    %410 = vector.broadcast %14 : vector<1x1xf32> to vector<1x256xf32>
    %411 = arith.addf %409, %410 : vector<1x256xf32>
    %c0_9 = arith.constant 0 : index
    %c0_10 = arith.constant 0 : index
    %412 = vector.load %arg4[%c0_9, %c0_10] : memref<3x256xf32, #tpu.memory_space<vmem>>, vector<1x256xf32>
    tpu.vector_store %arg4[%c0_9, %c0_10], %411 {strides = array<i32>} : memref<3x256xf32, #tpu.memory_space<vmem>>, vector<1x256xf32>,
    %c1 = arith.constant 1 : index
    %c0_11 = arith.constant 0 : index
    %413 = vector.load %arg4[%c1, %c0_11] : memref<3x256xf32, #tpu.memory_space<vmem>>, vector<1x256xf32>
    tpu.vector_store %arg4[%c1, %c0_11], %218 {strides = array<i32>} : memref<3x256xf32, #tpu.memory_space<vmem>>, vector<1x256xf32>,
    %c2 = arith.constant 2 : index
    %c0_12 = arith.constant 0 : index
    %414 = vector.load %arg4[%c2, %c0_12] : memref<3x256xf32, #tpu.memory_space<vmem>>, vector<1x256xf32>
    tpu.vector_store %arg4[%c2, %c0_12], %219 {strides = array<i32>} : memref<3x256xf32, #tpu.memory_space<vmem>>, vector<1x256xf32>,
    return
  }
  func.func @transform_0(%arg0: i32) -> (i32, i32) {
    %c0_i32 = arith.constant 0 : i32
    %c0_i32_0 = arith.constant 0 : i32
    return %c0_i32, %arg0 : i32, i32
  }
  func.func @transform_1(%arg0: i32) -> (i32, i32) {
    %c0_i32 = arith.constant 0 : i32
    %c0_i32_0 = arith.constant 0 : i32
    return %c0_i32, %arg0 : i32, i32
  }
  func.func @transform_2(%arg0: i32) -> (i32, i32) {
    %c0_i32 = arith.constant 0 : i32
    %c0_i32_0 = arith.constant 0 : i32
    %c0_i32_1 = arith.constant 0 : i32
    return %c0_i32, %c0_i32_0 : i32, i32
  }
  func.func @transform_3(%arg0: i32) -> (i32, i32) {
    %c0_i32 = arith.constant 0 : i32
    %c0_i32_0 = arith.constant 0 : i32
    return %c0_i32, %arg0 : i32, i32
  }
}

</mosaic_0001>

<bundles_post_ra>
// kernel: tpu_custom_call.1
= control target key start
LH: loop header
LB: loop body
LE: loop exit
PB: predicated region body
PF: predicated region fallthrough
CT: control target
= control target key end

     0   :  { %8 = vsyncpa [#allocation3], 0  ;;  %s2957_s0 = inlined_call_operand.vmem [shape: f32[1,1024], index: 0, kind: input, shape index: {}]   ;;  %s2958_s1 = inlined_call_operand.vmem [shape: f32[1,1024], index: 1, kind: input, shape index: {}]   ;;  %s2959_s2 = inlined_call_operand.vmem [shape: f32[40,32], index: 2, kind: input, shape index: {}]   ;;  %s2960_s3 = inlined_call_operand.hbm [shape: f32[3,1024], index: 3, kind: output, shape index: {}]  }
   0x1   :  { %10 = vsyncpa [#allocation3 + $0x1], 0  ;;  %s1911_s12 = smov 0   ;;  %s1913_s13 = smov 0  }
   0x2   :  { %s1915_s14 = smov 0   ;;  %s1917_s15 = smov 0  }
   0x3 LB: > { %s1932_s16 = sadd.s32 4294967295, %s1863_s15   ;;  %s1630_s17 = sadd.s32 4294967294, %s1863_s15   ;;  %s1863_s15 = sphi %s1917_s15, %s3029_s15   ;;  %s1859_s14 = sphi %s1915_s14, %s3028_s14   ;;  %s1855_s13 = sphi %s1913_s13, %s3027_s13   ;;  %s1851_s12 = sphi %s1911_s12, %s3026_s12  }
   0x4   : > { %s1936_s18 = sadd.s32 1, %s1863_s15   ;;  %s96_s19 = sadd.s32 1, %s1859_s14 }
   0x5   : > { %s93_s20 = ssub.s32 %s1863_s15, %s1936_s18  ;;  %p106_p0 = scmp.ne.s32.totalorder %s1859_s14, %s1855_s13 }
   0x6   : > { %p94_p1 = scmp.eq.s32.totalorder %s93_s20, 0  ;;  %p107_p2 = scmp.eq.s32.totalorder %s1932_s16, 3 }
   0x7   : > { %p112_p3 = scmp.ne.s32.totalorder %s1855_s13, %s1851_s12  ;;  %p113_p4 = scmp.eq.s32.totalorder %s1630_s17, 3 }
   0x8   : > { %s1947_s21 = scalar_select %p94_p1, %s1859_s14, %s96_s19  }
   0x9   : > { %p1949_p5 = por %p107_p2, %p106_p0  ;;  %p1953_p6 = por %p113_p4, %p112_p3 }
   0xa   : > { %p1633_p7 = scmp.ge.s32.totalorder %s1863_s15, 1  ;;  %p150_p8 = scmp.lt.s32.totalorder %s1863_s15, 5 }
   0xc   : > { %p151_p9 = pnand %p1633_p7, %p150_p8 }
   0xe   : > { %154 = sbr.rel (%p151_p9) target bundleno = 494 (0x1ee), region = 32 }
  0x15   : > { %v1962_v0 = vld [vmem:[%s2959_s2] sm:$0xff]  ;;  %v1865_v1 = vmov 18   ;;  %v1866_v2 = vmov 16   ;;  %v1969_v3 = vld [vmem:[%s2959_s2 + $0x8] sm:$0xff]  ;;  %v1867_v4 = vmov 0   ;;  %v1868_v5 = vmov 1  }
  0x16   : > { %1710 = vset.pattern.permute.xlu1 %v1865_v1  ;;  %1709 = vset.pattern.permute.xlu0 %v1866_v2  ;;  %v1869_v6 = vmov 2   ;;  %v2973_v7 = vmov 3   ;;  %v2970_v8 = vmov 4   ;;  %v2972_v9 = vmov 6   ;;  %v2022_v19 = vld [vmem:[%s2959_s2 + $0x20] sm:$0xff]  ;;  %v2050_v23 = vld [vmem:[%s2959_s2 + $0x10] sm:$0xff] }
  0x17   : > { %221 = vperm.xlu1 %1710, %v1962_v0   ;;  %197 = vperm.xlu0 %1709, %v1962_v0   ;;  %v2971_v10 = vmov 7   ;;  %v1874_v11 = vmov 5   ;;  %v2974_v12 = vmov 9   ;;  %v1876_v13 = vmov 10   ;;  %v2062_v24 = vld [vmem:[%s2959_s2 + $0x18] sm:$0xff]  ;;  %s1635_s7 = sshll.u32 %s1932_s16, 1 }
  0x18   : > { %v2967_v14 = vmov 12   ;;  %v2962_v15 = vmov 13   ;;  %v1879_v16 = vmov 8   ;;  %v2963_v17 = vmov 15   ;;  %p178_p10 = scmp.lt.s32.totalorder %s1635_s7, 7  ;;  %s174_s19 = sand.u32 1, %s1855_s13  }
  0x19   : > { %v1881_v18 = vmov 19   ;;  %v2968_v20 = vmov 11   ;;  %v2965_v21 = vmov 14   ;;  %v1884_v22 = vmov 17   ;;  %s1634_s25 = sshll.u32 %s174_s19, 3  ;;  %s1644_s30 = sshll.u32 %s1932_s16, 7 }
  0x1a   : > { %v2961_v34 = vlaneseq  ;;  %s3031_s7 = smov (!%p178_p10, %s1635_s7), 7  ;;  %v1885_v38 = vmov 20   ;;  %v1886_v44 = vmov 21   ;;  %s2641_s26 = scalar_lea.vmem [#allocation2], %s1634_s25 }
  0x1b   : > { %225 = vperm.xlu1 %1710, %v1969_v3   ;;  %202 = vperm.xlu0 %1709, %v1969_v3   ;;  %s180_s10 = scalar_lea.vmem %s2957_s0, %s3031_s7  ;;  %s185_s29 = scalar_lea.vmem %s2958_s1, %s3031_s7 }
  0x1c   : > { %v2127_v37 = vshrl.u32 %v2961_v34, 7  ;;  %v188_v43 = vld [vmem:[%s180_s10] sm:$0x3]  ;;  %s1565_s4 = sshll.u32 %s2641_s26, 4  ;;  %s2910_s7 = scalar_lea.hbm %s2960_s3, %s1644_s30  ;;  %s2912_s4 = int_to_ptr.vmem [resolvable:$true] %s1565_s4 }
  0x1d   : > { %s1551_s8 = scalar_lea.sflag [#allocation3], %s174_s19  ;;  %s1801_s16 = scalar_lea.vmem %s2912_s4, 128 }
  0x1e   : > { %2994 = vst [vmem:[#allocation5_spill] sm:$0xff] %v2127_v37  ;;  %v2137_v41 = vsub.s32 0, %v2127_v37  ;;  %v2140_v42 = vsub.s32 1, %v2127_v37  ;;  %v2169_v60 = vsub.s32 2, %v2127_v37  ;;  %p1802_p11 = scmp.ne.s32.totalorder %s2912_s4, %s1801_s16  ;;  %s1890_s9 = smov [#allocation2]  }
  0x1f   : > { %1712 = vset.pattern.permute.xlu1 %v1867_v4  ;;  %1711 = vset.pattern.permute.xlu0 %v1867_v4  ;;  %s1805_s10 = sshll.u32 %s1890_s9, 4  ;;  %s1806_s10 = int_to_ptr.vmem [resolvable:$false] %s1805_s10 }
  0x20   : > { %241 = vperm.xlu1 %1712, %v1969_v3   ;;  %237 = vperm.xlu0 %1711, %v1962_v0   ;;  %v209_v46 = vrot.slane %v188_v43, %v2137_v41  ;;  %v213_v47 = vrot.slane %v188_v43, %v2140_v42  ;;  %p1803_p12 = pnand %p1802_p11, %p1949_p5  ;;  %s1807_s11 = scalar_lea.vmem %s1806_s10, 256 }
  0x21   : > { %p1808_p0 = scmp.lt.s32.totalorder %s2912_s4, %s1806_s10  ;;  %p1809_p1 = scmp.lt.s32.totalorder %s1807_s11, %s1801_s16 }
  0x22   : > { %p1804_p13 = pneg %p1803_p12 }
  0x23   : > { %p1810_p2 = por %p1809_p1, %p1808_p0 }
  0x24   : > { %1713 = vset.pattern.permute.xlu1 %v1868_v5  ;;  %1714 = vset.pattern.permute.xlu0 %v1868_v5 }
  0x25   : > { %257 = vperm.xlu1 %1713, %v1962_v0   ;;  %261 = vperm.xlu0 %1714, %v1969_v3   ;;  %p1811_p3 = pnand %p1810_p2, %p1804_p13 }
  0x29   : > { %1715 = vset.pattern.permute.xlu1 %v1869_v6  ;;  %1716 = vset.pattern.permute.xlu0 %v2973_v7 }
  0x2a   : > { %281 = vperm.xlu1 %1715, %v1962_v0   ;;  %305 = vperm.xlu0 %1716, %v1962_v0  }
  0x2e   : > { %285 = vperm.xlu1 %1715, %v1969_v3   ;;  %1719 = vset.pattern.permute.xlu0 %v2970_v8 }
  0x2f   : > { %333 = vperm.xlu0 %1719, %v1969_v3  }
  0x32   : > { %1717 = vset.pattern.permute.xlu1 %v2973_v7 }
  0x33   : > { %309 = vperm.xlu1 %1717, %v1969_v3   ;;  %1721 = vset.pattern.permute.xlu0 %v2972_v9 }
  0x34   : > { %377 = vperm.xlu0 %1721, %v1962_v0  }
  0x37   : > { %1718 = vset.pattern.permute.xlu1 %v2970_v8 }
  0x38   : > { %329 = vperm.xlu1 %1718, %v1962_v0   ;;  %1724 = vset.pattern.permute.xlu0 %v2971_v10 }
  0x39   : > { %405 = vperm.xlu0 %1724, %v1969_v3  }
  0x3c   : > { %1720 = vset.pattern.permute.xlu1 %v1874_v11 }
  0x3d   : > { %353 = vperm.xlu1 %1720, %v1962_v0   ;;  %1726 = vset.pattern.permute.xlu0 %v2974_v12 }
  0x3e   : > { %449 = vperm.xlu0 %1726, %v1962_v0  }
  0x41   : > { %357 = vperm.xlu1 %1720, %v1969_v3  }
  0x42   : > { %1729 = vset.pattern.permute.xlu0 %v1876_v13 }
  0x43   : > { %477 = vperm.xlu0 %1729, %v1969_v3  }
  0x45   : > { %1722 = vset.pattern.permute.xlu1 %v2972_v9 }
  0x46   : > { %381 = vperm.xlu1 %1722, %v1969_v3  }
  0x47   : > { %1731 = vset.pattern.permute.xlu0 %v2967_v14 }
  0x48   : > { %521 = vperm.xlu0 %1731, %v1962_v0  }
  0x4a   : > { %1723 = vset.pattern.permute.xlu1 %v2971_v10 }
  0x4b   : > { %401 = vperm.xlu1 %1723, %v1962_v0  }
  0x4c   : > { %1734 = vset.pattern.permute.xlu0 %v2962_v15 }
  0x4d   : > { %549 = vperm.xlu0 %1734, %v1969_v3  }
  0x4f   : > { %1725 = vset.pattern.permute.xlu1 %v1879_v16 }
  0x50   : > { %425 = vperm.xlu1 %1725, %v1962_v0  }
  0x51   : > { %1736 = vset.pattern.permute.xlu0 %v2963_v17 }
  0x52   : > { %593 = vperm.xlu0 %1736, %v1962_v0  }
  0x54   : > { %429 = vperm.xlu1 %1725, %v1969_v3  }
  0x56   : > { %1739 = vset.pattern.permute.xlu0 %v1881_v18 }
  0x57   : > { %621 = vperm.xlu0 %1739, %v1969_v3  }
  0x58   : > { %1727 = vset.pattern.permute.xlu1 %v2974_v12 }
  0x59   : > { %453 = vperm.xlu1 %1727, %v1969_v3  }
  0x5b   : > { %1742 = vset.pattern.permute.xlu0 %v1869_v6 }
  0x5c   : > { %664 = vperm.xlu0 %1742, %v2022_v19  }
  0x5d   : > { %1728 = vset.pattern.permute.xlu1 %v1876_v13 }
  0x5e   : > { %473 = vperm.xlu1 %1728, %v1962_v0  }
  0x60   : > { %1745 = vset.pattern.permute.xlu0 %v1874_v11 }
  0x61   : > { %712 = vperm.xlu0 %1745, %v2022_v19  }
  0x62   : > { %1730 = vset.pattern.permute.xlu1 %v2968_v20 }
  0x63   : > { %497 = vperm.xlu1 %1730, %v1962_v0  }
  0x65   : > { %1748 = vset.pattern.permute.xlu0 %v1879_v16 }
  0x66   : > { %760 = vperm.xlu0 %1748, %v2022_v19  }
  0x67   : > { %501 = vperm.xlu1 %1730, %v1969_v3  }
  0x6a   : > { %1751 = vset.pattern.permute.xlu0 %v2968_v20 }
  0x6b   : > { %1732 = vset.pattern.permute.xlu1 %v2967_v14  ;;  %808 = vperm.xlu0 %1751, %v2022_v19  }
  0x6c   : > { %525 = vperm.xlu1 %1732, %v1969_v3  }
  0x6f   : > { %1754 = vset.pattern.permute.xlu0 %v2965_v21 }
  0x70   : > { %1733 = vset.pattern.permute.xlu1 %v2962_v15  ;;  %856 = vperm.xlu0 %1754, %v2022_v19  }
  0x71   : > { %545 = vperm.xlu1 %1733, %v1962_v0  }
  0x74   : > { %1757 = vset.pattern.permute.xlu0 %v1884_v22 }
  0x75   : > { %1735 = vset.pattern.permute.xlu1 %v2965_v21  ;;  %933 = vperm.xlu0 %1757, %v1962_v0  }
  0x76   : > { %569 = vperm.xlu1 %1735, %v1962_v0  }
  0x79   : > { %1762 = vset.pattern.permute.xlu0 %v2973_v7 }
  0x7a   : > { %573 = vperm.xlu1 %1735, %v1969_v3   ;;  %1039 = vperm.xlu0 %1762, %v2050_v23  }
  0x7e   : > { %1737 = vset.pattern.permute.xlu1 %v2963_v17  ;;  %1763 = vset.pattern.permute.xlu0 %v1867_v4 }
  0x7f   : > { %597 = vperm.xlu1 %1737, %v1969_v3   ;;  %970 = vperm.xlu0 %1763, %v2050_v23  }
  0x83   : > { %1738 = vset.pattern.permute.xlu1 %v1881_v18  ;;  %975 = vperm.xlu0 %1763, %v2062_v24   ;;  %v2204_v18 = vsub.s32 3, %v2127_v37 }
  0x84   : > { %617 = vperm.xlu1 %1738, %v1962_v0  }
  0x87   : > { %1770 = vset.pattern.permute.xlu0 %v1869_v6 }
  0x88   : > { %1740 = vset.pattern.permute.xlu1 %v1867_v4  ;;  %1019 = vperm.xlu0 %1770, %v2062_v24  }
  0x89   : > { %634 = vperm.xlu1 %1740, %v2022_v19  }
  0x8c   : > { %1773 = vset.pattern.permute.xlu0 %v1876_v13 }
  0x8d   : > { %1741 = vset.pattern.permute.xlu1 %v1868_v5  ;;  %1207 = vperm.xlu0 %1773, %v2050_v23  }
  0x8e   : > { %648 = vperm.xlu1 %1741, %v2022_v19  }
  0x91   : > { %1774 = vset.pattern.permute.xlu0 %v1874_v11 }
  0x92   : > { %1743 = vset.pattern.permute.xlu1 %v2973_v7  ;;  %1087 = vperm.xlu0 %1774, %v2050_v23  }
  0x93   : > { %680 = vperm.xlu1 %1743, %v2022_v19  }
  0x96   : > { %v2078_v25 = vpop.permute.xlu1 %221  ;;  %1091 = vperm.xlu0 %1774, %v2062_v24   ;;  %v198_v32 = vpop.permute.xlu0 %197 }
  0x97   : > { %1744 = vset.pattern.permute.xlu1 %v2970_v8  ;;  %v216_v49 = vmul.f32 %v209_v46, %v198_v32  ;;  %v217_v50 = vmul.f32 %v213_v47, %v198_v32 }
  0x98   : > { %696 = vperm.xlu1 %1744, %v2022_v19  }
  0x99   : > { %v228_v53 = vadd.f32 %v2078_v25, %v216_v49  ;;  %v229_v54 = vadd.f32 %v2078_v25, %v217_v50  ;;  %v2217_v50 = vsub.s32 5, %v2127_v37 }
  0x9a   : > { %v2083_v26 = vpop.permute.xlu1 %225  ;;  %1779 = vset.pattern.permute.xlu0 %v2962_v15  ;;  %v203_v35 = vpop.permute.xlu0 %202 }
  0x9b   : > { %1279 = vperm.xlu0 %1779, %v2050_v23   ;;  %v2159_v56 = vmax.f32 %v228_v53, 0.0  ;;  %v2161_v57 = vmax.f32 %v229_v54, 0.0  ;;  %v218_v43 = vmul.f32 %v209_v46, %v203_v35  ;;  %v219_v49 = vmul.f32 %v213_v47, %v203_v35 }
  0x9c   : > { %1746 = vset.pattern.permute.xlu1 %v2972_v9 }
  0x9d   : > { %728 = vperm.xlu1 %1746, %v2022_v19   ;;  %v2174_v61 = vrot.slane %v2159_v56, %v2137_v41  ;;  %v2178_v62 = vrot.slane %v2161_v57, %v2137_v41  ;;  %v2182_v63 = vrot.slane %v2159_v56, %v2140_v42  ;;  %v2186_v1 = vrot.slane %v2161_v57, %v2140_v42 }
  0x9e   : > { %v2198_v11 = vrot.slane %v2161_v57, %v2169_v60  ;;  %v2221_v34 = vrot.slane %v2159_v56, %v2204_v18 }
  0x9f   : > { %v2089_v27 = vpop.permute.xlu1 %241  ;;  %1782 = vset.pattern.permute.xlu0 %v1879_v16  ;;  %v238_v40 = vpop.permute.xlu0 %237 }
  0xa0   : > { %1163 = vperm.xlu0 %1782, %v2062_v24   ;;  %v252_v25 = vmul.f32 %v2174_v61, %v238_v40  ;;  %v254_v7 = vmul.f32 %v2174_v61, %v2089_v27 }
  0xa1   : > { %1747 = vset.pattern.permute.xlu1 %v2971_v10 }
  0xa2   : > { %744 = vperm.xlu1 %1747, %v2022_v19  }
  0xa4   : > { %v2095_v28 = vpop.permute.xlu1 %257  ;;  %1785 = vset.pattern.permute.xlu0 %v1876_v13  ;;  %v2147_v48 = vpop.permute.xlu0 %261 }
  0xa5   : > { %1211 = vperm.xlu0 %1785, %v2062_v24   ;;  %v272_v2 = vmul.f32 %v2182_v63, %v2095_v28  ;;  %v273_v4 = vmul.f32 %v2186_v1, %v2095_v28  ;;  %v253_v28 = vmul.f32 %v2178_v62, %v238_v40  ;;  %v2225_v40 = vrot.slane %v2161_v57, %v2204_v18 }
  0xa6   : > { %1749 = vset.pattern.permute.xlu1 %v2974_v12 }
  0xa7   : > { %776 = vperm.xlu1 %1749, %v2022_v19   ;;  %v276_v53 = vadd.f32 %v272_v2, %v252_v25  ;;  %v277_v54 = vadd.f32 %v273_v4, %v253_v28  ;;  %v230_v2 = vadd.f32 %v2083_v26, %v218_v43  ;;  %v231_v4 = vadd.f32 %v2083_v26, %v219_v49 }
  0xa8   : > { %v2244_v28 = vrot.slane %v2159_v56, %v2217_v50  ;;  %v2258_v49 = vsub.s32 6, %v2127_v37 }
  0xa9   : > { %v2101_v29 = vpop.permute.xlu1 %281  ;;  %1788 = vset.pattern.permute.xlu0 %v2967_v14  ;;  %v306_v52 = vpop.permute.xlu0 %305 }
  0xaa   : > { %1259 = vperm.xlu0 %1788, %v2062_v24  }
  0xab   : > { %1750 = vset.pattern.permute.xlu1 %v1876_v13 }
  0xac   : > { %792 = vperm.xlu1 %1750, %v2022_v19  }
  0xad   : > { %v2107_v30 = vpop.permute.xlu1 %285 }
  0xae   : > { %1791 = vset.pattern.permute.xlu0 %v2963_v17  ;;  %v2163_v58 = vpop.permute.xlu0 %333 }
  0xaf   : > { %1331 = vperm.xlu0 %1791, %v2062_v24  }
  0xb0   : > { %1752 = vset.pattern.permute.xlu1 %v2967_v14  ;;  %v2268_v14 = vmax.f32 %v230_v2, 0.0 }
  0xb1   : > { %824 = vperm.xlu1 %1752, %v2022_v19  }
  0xb2   : > { %v2113_v31 = vpop.permute.xlu1 %309 }
  0xb5   : > { %1753 = vset.pattern.permute.xlu1 %v2962_v15 }
  0xb6   : > { %840 = vperm.xlu1 %1753, %v2022_v19  }
  0xb7   : > { %v2118_v33 = vpop.permute.xlu1 %329 }
  0xba   : > { %1755 = vset.pattern.permute.xlu1 %v2963_v17 }
  0xbb   : > { %872 = vperm.xlu1 %1755, %v2022_v19   ;;  %v2207_v19 = vsub.s32 4, %v2127_v37 }
  0xbc   : > { %v2124_v36 = vpop.permute.xlu1 %353 }
  0xbd   : > { %v2229_v15 = vrot.slane %v2159_v56, %v2207_v19  ;;  %v2235_v47 = vrot.slane %v2161_v57, %v2207_v19 }
  0xbf   : > { %1756 = vset.pattern.permute.xlu1 %v1885_v38  ;;  %v297_v38 = vmul.f32 %v2198_v11, %v2101_v29  ;;  %v344_v26 = vmul.f32 %v2229_v15, %v2118_v33  ;;  %v345_v43 = vmul.f32 %v2235_v47, %v2118_v33  ;;  %v2270_v33 = vmax.f32 %v231_v4, 0.0 }
  0xc0   : > { %888 = vperm.xlu1 %1756, %v1962_v0   ;;  %v2134_v39 = vpop.permute.xlu1 %357 }
  0xc1   : > { %v301_v46 = vadd.f32 %v297_v38, %v277_v54  ;;  %v320_v38 = vmul.f32 %v2221_v34, %v306_v52 }
  0xc4   : > { %1758 = vset.pattern.permute.xlu1 %v1886_v44 }
  0xc5   : > { %953 = vperm.xlu1 %1758, %v1962_v0   ;;  %v2143_v45 = vpop.permute.xlu1 %381 }
  0xc9   : > { %1759 = vset.pattern.permute.xlu1 %v1884_v22  ;;  %v378_v22 = vpop.permute.xlu0 %377 }
  0xca   : > { %937 = vperm.xlu1 %1759, %v1969_v3   ;;  %v2151_v51 = vpop.permute.xlu1 %401 }
  0xcd   : > { %v2240_v25 = vpop.permute.xlu0 %405 }
  0xce   : > { %1760 = vset.pattern.permute.xlu1 %v1868_v5 }
  0xcf   : > { %991 = vperm.xlu1 %1760, %v2050_v23   ;;  %v2157_v55 = vpop.permute.xlu1 %425 }
  0xd3   : > { %1761 = vset.pattern.permute.xlu1 %v1869_v6  ;;  %v2166_v59 = vpop.permute.xlu1 %429  ;;  %v2194_v6 = vrot.slane %v2159_v56, %v2169_v60 }
  0xd4   : > { %1015 = vperm.xlu1 %1761, %v2050_v23  }
  0xd5   : > { %v296_v32 = vmul.f32 %v2194_v6, %v2101_v29  ;;  %v298_v61 = vmul.f32 %v2194_v6, %v2107_v30  ;;  %v322_v6 = vmul.f32 %v2221_v34, %v2113_v31 }
  0xd7   : > { %v300_v35 = vadd.f32 %v296_v32, %v276_v53  ;;  %v2964_v32 = vmov 23   ;;  %v2261_v53 = vsub.s32 7, %v2127_v37  ;;  %v2369_v37 = vrot.slane %v2268_v14, %v2207_v19 }
  0xd8   : > { %1764 = vset.pattern.permute.xlu1 %v2970_v8  ;;  %v2201_v13 = vpop.permute.xlu1 %453  ;;  %1794 = vset.pattern.permute.xlu0 %v2964_v32  ;;  %v368_v32 = vmul.f32 %v2244_v28, %v2124_v36 }
  0xd9   : > { %1063 = vperm.xlu1 %1764, %v2050_v23   ;;  %v324_v54 = vadd.f32 %v320_v38, %v300_v35  ;;  %v2275_v35 = vrot.slane %v2159_v56, %v2258_v49  ;;  %v2283_v38 = vrot.slane %v2159_v56, %v2261_v53  ;;  %v2287_v2 = vrot.slane %v2161_v57, %v2261_v53 }
  0xdb   : > { %v348_v20 = vadd.f32 %v344_v26, %v324_v54  ;;  %v2293_v26 = vrot.slane %v2268_v14, %v2137_v41  ;;  %v392_v56 = vmul.f32 %v2275_v35, %v378_v22 }
  0xdd   : > { %1765 = vset.pattern.permute.xlu1 %v1886_v44  ;;  %v2231_v29 = vpop.permute.xlu1 %473  ;;  %v2248_v44 = vrot.slane %v2161_v57, %v2217_v50  ;;  %v372_v4 = vadd.f32 %v368_v32, %v348_v20  ;;  %v416_v20 = vmul.f32 %v2283_v38, %v2151_v51  ;;  %v275_v32 = vmul.f32 %v2186_v1, %v2147_v48 }
  0xde   : > { %957 = vperm.xlu1 %1765, %v1969_v3   ;;  %v321_v3 = vmul.f32 %v2225_v40, %v306_v52  ;;  %v2329_v1 = vrot.slane %v2270_v33, %v2140_v42 }
  0xdf   : > { %v369_v52 = vmul.f32 %v2248_v44, %v2124_v36  ;;  %v450_v36 = vpop.permute.xlu0 %449 }
  0xe0   : > { %v325_v17 = vadd.f32 %v321_v3, %v301_v46  ;;  %v2279_v46 = vrot.slane %v2161_v57, %v2258_v49  ;;  %v274_v57 = vmul.f32 %v2182_v63, %v2147_v48  ;;  %v2325_v48 = vrot.slane %v2268_v14, %v2140_v42 }
  0xe2   : > { %1766 = vset.pattern.permute.xlu1 %v2972_v9  ;;  %v498_v21 = vpop.permute.xlu1 %497  ;;  %v349_v8 = vadd.f32 %v345_v43, %v325_v17  ;;  %v2297_v43 = vrot.slane %v2270_v33, %v2137_v41  ;;  %v393_v54 = vmul.f32 %v2279_v46, %v378_v22  ;;  %v440_v9 = vmul.f32 %v2293_v26, %v2157_v55 }
  0xe3   : > { %1111 = vperm.xlu1 %1766, %v2050_v23   ;;  %v2319_v12 = vpop.permute.xlu0 %477 }
  0xe4   : > { %v373_v3 = vadd.f32 %v369_v52, %v349_v8  ;;  %v417_v8 = vmul.f32 %v2287_v2, %v2151_v51  ;;  %v396_v52 = vadd.f32 %v392_v56, %v372_v4  ;;  %v441_v22 = vmul.f32 %v2297_v43, %v2157_v55 }
  0xe5   : > { %v255_v51 = vmul.f32 %v2178_v62, %v2089_v27  ;;  %v299_v27 = vmul.f32 %v2198_v11, %v2107_v30  ;;  %v2338_v62 = vrot.slane %v2268_v14, %v2169_v60  ;;  %v278_v56 = vadd.f32 %v274_v57, %v254_v7 }
  0xe6   : > { %v2289_v17 = vpop.permute.xlu1 %501  ;;  %v420_v4 = vadd.f32 %v416_v20, %v396_v52  ;;  %v323_v30 = vmul.f32 %v2225_v40, %v2113_v31  ;;  %v2351_v11 = vrot.slane %v2268_v14, %v2204_v18  ;;  %v2355_v20 = vrot.slane %v2270_v33, %v2204_v18 }
  0xe7   : > { %1767 = vset.pattern.permute.xlu1 %v2971_v10  ;;  %v397_v10 = vadd.f32 %v393_v54, %v373_v3  ;;  %v2342_v3 = vrot.slane %v2270_v33, %v2169_v60  ;;  %v465_v7 = vmul.f32 %v2329_v1, %v450_v36  ;;  %v302_v31 = vadd.f32 %v298_v61, %v278_v56 }
  0xe8   : > { %1135 = vperm.xlu1 %1767, %v2050_v23   ;;  %v444_v54 = vadd.f32 %v440_v9, %v420_v4  ;;  %v488_v9 = vmul.f32 %v2338_v62, %v2231_v29  ;;  %v513_v4 = vmul.f32 %v2355_v20, %v498_v21  ;;  %v2381_v61 = vrot.slane %v2270_v33, %v2217_v50 }
  0xe9   : > { %v421_v55 = vadd.f32 %v417_v8, %v397_v10  ;;  %v279_v10 = vadd.f32 %v275_v32, %v255_v51  ;;  %v464_v8 = vmul.f32 %v2325_v48, %v450_v36  ;;  %v489_v34 = vmul.f32 %v2342_v3, %v2231_v29  ;;  %v522_v32 = vpop.permute.xlu0 %521 }
  0xea   : > { %v512_v51 = vmul.f32 %v2351_v11, %v498_v21  ;;  %v326_v36 = vadd.f32 %v322_v6, %v302_v31  ;;  %v2373_v29 = vrot.slane %v2270_v33, %v2207_v19  ;;  %v346_v56 = vmul.f32 %v2229_v15, %v2163_v58 }
  0xeb   : > { %v2321_v63 = vpop.permute.xlu1 %525  ;;  %v303_v40 = vadd.f32 %v299_v27, %v279_v10  ;;  %v468_v52 = vadd.f32 %v464_v8, %v444_v54  ;;  %v347_v10 = vmul.f32 %v2235_v47, %v2163_v58  ;;  %v370_v54 = vmul.f32 %v2244_v28, %v2134_v39 }
  0xec   : > { %1768 = vset.pattern.permute.xlu1 %v1868_v5  ;;  %v445_v5 = vadd.f32 %v441_v22, %v421_v55  ;;  %v2995_v15 = vmov 9   ;;  %v350_v58 = vadd.f32 %v346_v56, %v326_v36  ;;  %v394_v28 = vmul.f32 %v2275_v35, %v2143_v45 }
  0xed   : > { %995 = vperm.xlu1 %1768, %v2062_v24   ;;  %v327_v55 = vadd.f32 %v323_v30, %v303_v40  ;;  %v492_v21 = vadd.f32 %v488_v9, %v468_v52  ;;  %v2397_v9 = vrot.slane %v2270_v33, %v2258_v49  ;;  %v537_v31 = vmul.f32 %v2373_v29, %v522_v32 }
  0xee   : > { %v469_v22 = vadd.f32 %v465_v7, %v445_v5  ;;  %v371_v5 = vmul.f32 %v2248_v44, %v2134_v39  ;;  %v2393_v7 = vrot.slane %v2268_v14, %v2258_v49  ;;  %v395_v39 = vmul.f32 %v2279_v46, %v2143_v45  ;;  %v2404_v44 = vpop.permute.xlu0 %549 }
  0xef   : > { %v516_v30 = vadd.f32 %v512_v51, %v492_v21  ;;  %v351_v47 = vadd.f32 %v347_v10, %v327_v55  ;;  %v419_v10 = vmul.f32 %v2287_v2, %v2240_v25 }
  0xf0   : > { %v546_v57 = vpop.permute.xlu1 %545  ;;  %v493_v27 = vadd.f32 %v489_v34, %v469_v22  ;;  %v536_v34 = vmul.f32 %v2369_v37, %v522_v32  ;;  %v374_v22 = vadd.f32 %v370_v54, %v350_v58 }
  0xf1   : > { %1769 = vset.pattern.permute.xlu1 %v1879_v16  ;;  %v2377_v16 = vrot.slane %v2268_v14, %v2217_v50  ;;  %v561_v52 = vmul.f32 %v2381_v61, %v546_v57  ;;  %v375_v51 = vadd.f32 %v371_v5, %v351_v47  ;;  %v2423_v5 = vrot.slane %v2268_v14, %v2261_v53 }
  0xf2   : > { %1159 = vperm.xlu1 %1769, %v2050_v23   ;;  %v517_v8 = vadd.f32 %v513_v4, %v493_v27  ;;  %v540_v35 = vadd.f32 %v536_v34, %v516_v30  ;;  %v398_v55 = vadd.f32 %v394_v28, %v374_v22  ;;  %v2996_v27 = vmov 3   ;;  %v594_v54 = vpop.permute.xlu0 %593 }
  0xf3   : > { %v560_v40 = vmul.f32 %v2377_v16, %v546_v57  ;;  %v399_v21 = vadd.f32 %v395_v39, %v375_v51  ;;  %v418_v57 = vmul.f32 %v2283_v38, %v2240_v25  ;;  %v442_v30 = vmul.f32 %v2293_v26, %v2166_v59 }
  0xf4   : > { %v541_v36 = vadd.f32 %v537_v31, %v517_v8  ;;  %v443_v8 = vmul.f32 %v2297_v43, %v2166_v59  ;;  %v608_v2 = vmul.f32 %v2423_v5, %v594_v54  ;;  %v466_v39 = vmul.f32 %v2325_v48, %v2201_v13 }
  0xf5   : > { %v570_v6 = vpop.permute.xlu1 %569  ;;  %v564_v56 = vadd.f32 %v560_v40, %v540_v35  ;;  %v422_v28 = vadd.f32 %v418_v57, %v398_v55  ;;  %v423_v25 = vadd.f32 %v419_v10, %v399_v21  ;;  %v2997_v34 = vmov 4  }
  0xf6   : > { %1771 = vset.pattern.permute.xlu1 %v2995_v15  ;;  %v584_v45 = vmul.f32 %v2393_v7, %v570_v6  ;;  %v585_v46 = vmul.f32 %v2397_v9, %v570_v6  ;;  %v565_v32 = vadd.f32 %v561_v52, %v541_v36  ;;  %v2427_v6 = vrot.slane %v2270_v33, %v2261_v53 }
  0xf7   : > { %1183 = vperm.xlu1 %1771, %v2050_v23   ;;  %v467_v33 = vmul.f32 %v2329_v1, %v2201_v13  ;;  %v446_v59 = vadd.f32 %v442_v30, %v422_v28  ;;  %v447_v26 = vadd.f32 %v443_v8, %v423_v25  ;;  %v2998_v36 = vmov 11  }
  0xf8   : > { %v588_v58 = vadd.f32 %v584_v45, %v564_v56  ;;  %v589_v38 = vadd.f32 %v585_v46, %v565_v32  ;;  %v609_v14 = vmul.f32 %v2427_v6, %v594_v54  ;;  %v490_v48 = vmul.f32 %v2338_v62, %v2319_v12 }
  0xf9   : > { %v2411_v4 = vpop.permute.xlu1 %573  ;;  %v470_v52 = vadd.f32 %v466_v39, %v446_v59  ;;  %v471_v22 = vadd.f32 %v467_v33, %v447_v26  ;;  %v491_v13 = vmul.f32 %v2342_v3, %v2319_v12  ;;  %v514_v46 = vmul.f32 %v2351_v11, %v2289_v17 }
  0xfa   : > { %v612_v43 = vadd.f32 %v608_v2, %v588_v58  ;;  %v613_v31 = vadd.f32 %v609_v14, %v589_v38  ;;  %v515_v55 = vmul.f32 %v2355_v20, %v2289_v17  ;;  %v538_v62 = vmul.f32 %v2369_v37, %v2321_v63  ;;  %v622_v20 = vpop.permute.xlu0 %621 }
  0xfb   : > { %1772 = vset.pattern.permute.xlu1 %v2996_v27  ;;  %v494_v21 = vadd.f32 %v490_v48, %v470_v52  ;;  %v495_v27 = vadd.f32 %v491_v13, %v471_v22  ;;  %v539_v12 = vmul.f32 %v2373_v29, %v2321_v63  ;;  %v2999_v11 = vmov 12  }
  0xfc   : > { %1043 = vperm.xlu1 %1772, %v2062_v24   ;;  %v562_v2 = vmul.f32 %v2377_v16, %v2404_v44  ;;  %v563_v14 = vmul.f32 %v2381_v61, %v2404_v44  ;;  %v586_v39 = vmul.f32 %v2393_v7, %v2411_v4  ;;  %v587_v33 = vmul.f32 %v2397_v9, %v2411_v4 }
  0xfd   : > { %v518_v57 = vadd.f32 %v514_v46, %v494_v21  ;;  %v519_v17 = vadd.f32 %v515_v55, %v495_v27 }
  0xfe   : > { %v598_v47 = vpop.permute.xlu1 %597 }
  0xff   : > { %v542_v63 = vadd.f32 %v538_v62, %v518_v57  ;;  %v543_v29 = vadd.f32 %v539_v12, %v519_v17  ;;  %v610_v16 = vmul.f32 %v2423_v5, %v598_v47  ;;  %v611_v61 = vmul.f32 %v2427_v6, %v598_v47 }
 0x100   : > { %1775 = vset.pattern.permute.xlu1 %v2997_v34  ;;  %v3000_v34 = vmov 6   ;;  %v3001_v47 = vmov 7  }
 0x101   : > { %1067 = vperm.xlu1 %1775, %v2062_v24  }
 0x103   : > { %v618_v40 = vpop.permute.xlu1 %617 }
 0x104   : > { %v624_v51 = vadd.f32 %v618_v40, %v612_v43  ;;  %v625_v35 = vadd.f32 %v618_v40, %v613_v31  ;;  %v2491_v43 = vpop.permute.xlu0 %664  ;;  %v566_v31 = vadd.f32 %v562_v2, %v542_v63  ;;  %v567_v40 = vadd.f32 %v563_v14, %v543_v29 }
 0x105   : > { %1776 = vset.pattern.permute.xlu1 %v2998_v36 }
 0x106   : > { %v2446_v1 = vmax.f32 %v624_v51, 0.0  ;;  %v2448_v45 = vmax.f32 %v625_v35, 0.0  ;;  %1231 = vperm.xlu1 %1776, %v2050_v23   ;;  %v590_v22 = vadd.f32 %v586_v39, %v566_v31  ;;  %v591_v51 = vadd.f32 %v587_v33, %v567_v40 }
 0x108   : > { %v2455_v56 = vpop.permute.xlu1 %634  ;;  %v640_v3 = vrot.slane %v2446_v1, %v2137_v41  ;;  %v644_v32 = vrot.slane %v2448_v45, %v2137_v41  ;;  %v654_v10 = vrot.slane %v2446_v1, %v2140_v42  ;;  %v658_v37 = vrot.slane %v2448_v45, %v2140_v42 }
 0x109   : > { %v670_v28 = vrot.slane %v2446_v1, %v2169_v60  ;;  %v674_v25 = vrot.slane %v2448_v45, %v2169_v60  ;;  %v686_v4 = vrot.slane %v2446_v1, %v2204_v18  ;;  %v690_v52 = vrot.slane %v2448_v45, %v2204_v18 }
 0x10a   : > { %1777 = vset.pattern.permute.xlu1 %v2999_v11  ;;  %v645_v54 = vmul.f32 %v640_v3, %v2455_v56  ;;  %v646_v30 = vmul.f32 %v644_v32, %v2455_v56  ;;  %v614_v13 = vadd.f32 %v610_v16, %v590_v22  ;;  %v615_v46 = vadd.f32 %v611_v61, %v591_v51 }
 0x10b   : > { %1255 = vperm.xlu1 %1777, %v2050_v23   ;;  %v675_v7 = vmul.f32 %v670_v28, %v2491_v43  ;;  %v676_v9 = vmul.f32 %v674_v25, %v2491_v43  ;;  %v702_v55 = vrot.slane %v2446_v1, %v2207_v19  ;;  %v706_v21 = vrot.slane %v2448_v45, %v2207_v19 }
 0x10c   : > { %v718_v62 = vrot.slane %v2446_v1, %v2217_v50  ;;  %v722_v12 = vrot.slane %v2448_v45, %v2217_v50  ;;  %v626_v17 = vadd.f32 %v622_v20, %v614_v13  ;;  %v734_v28 = vrot.slane %v2446_v1, %v2258_v49 }
 0x10d   : > { %v2473_v8 = vpop.permute.xlu1 %648  ;;  %v754_v31 = vrot.slane %v2448_v45, %v2261_v53 }
 0x10e   : > { %v659_v58 = vmul.f32 %v654_v10, %v2473_v8  ;;  %v660_v38 = vmul.f32 %v658_v37, %v2473_v8  ;;  %v627_v10 = vadd.f32 %v622_v20, %v615_v46  ;;  %v3002_v37 = vmov 14  }
 0x10f   : > { %1778 = vset.pattern.permute.xlu1 %v3000_v34  ;;  %v738_v20 = vrot.slane %v2448_v45, %v2258_v49  ;;  %v2531_v25 = vmax.f32 %v626_v17, 0.0  ;;  %v1888_v46 = vmov 22  }
 0x110   : > { %v661_v59 = vadd.f32 %v659_v58, %v645_v54  ;;  %v662_v26 = vadd.f32 %v660_v38, %v646_v30  ;;  %1115 = vperm.xlu1 %1778, %v2062_v24   ;;  %v2521_v54 = vpop.permute.xlu0 %712  ;;  %v2533_v2 = vmax.f32 %v627_v10, 0.0 }
 0x111   : > { %v723_v58 = vmul.f32 %v718_v62, %v2521_v54  ;;  %v724_v38 = vmul.f32 %v722_v12, %v2521_v54  ;;  %v766_v40 = vrot.slane %v2531_v25, %v2137_v41  ;;  %v814_v62 = vrot.slane %v2531_v25, %v2204_v18 }
 0x112   : > { %v2495_v44 = vpop.permute.xlu1 %680  ;;  %v677_v35 = vadd.f32 %v675_v7, %v661_v59  ;;  %v678_v48 = vadd.f32 %v676_v9, %v662_v26  ;;  %v3003_v59 = vmov 15   ;;  %v750_v26 = vrot.slane %v2446_v1, %v2261_v53 }
 0x113   : > { %v691_v5 = vmul.f32 %v686_v4, %v2495_v44  ;;  %v692_v6 = vmul.f32 %v690_v52, %v2495_v44  ;;  %v770_v16 = vrot.slane %v2533_v2, %v2137_v41  ;;  %v818_v12 = vrot.slane %v2533_v2, %v2204_v18 }
 0x114   : > { %1780 = vset.pattern.permute.xlu1 %v3001_v47  ;;  %v2553_v45 = vpop.permute.xlu0 %760 }
 0x115   : > { %1139 = vperm.xlu1 %1780, %v2062_v24   ;;  %v693_v3 = vadd.f32 %v691_v5, %v677_v35  ;;  %v694_v32 = vadd.f32 %v692_v6, %v678_v48  ;;  %v771_v22 = vmul.f32 %v766_v40, %v2553_v45  ;;  %v772_v51 = vmul.f32 %v770_v16, %v2553_v45 }
 0x116   : > { %v782_v48 = vrot.slane %v2531_v25, %v2140_v42  ;;  %v786_v5 = vrot.slane %v2533_v2, %v2140_v42  ;;  %v850_v40 = vrot.slane %v2533_v2, %v2217_v50 }
 0x117   : > { %v2511_v27 = vpop.permute.xlu1 %696 }
 0x118   : > { %v707_v11 = vmul.f32 %v702_v55, %v2511_v27  ;;  %v708_v57 = vmul.f32 %v706_v21, %v2511_v27  ;;  %v798_v55 = vrot.slane %v2531_v25, %v2169_v60  ;;  %v802_v21 = vrot.slane %v2533_v2, %v2169_v60 }
 0x119   : > { %1781 = vset.pattern.permute.xlu1 %v3002_v37 }
 0x11a   : > { %v709_v63 = vadd.f32 %v707_v11, %v693_v3  ;;  %v710_v29 = vadd.f32 %v708_v57, %v694_v32  ;;  %1303 = vperm.xlu1 %1781, %v2050_v23  }
 0x11c   : > { %v2523_v30 = vpop.permute.xlu1 %728  ;;  %v725_v14 = vadd.f32 %v723_v58, %v709_v63  ;;  %v726_v39 = vadd.f32 %v724_v38, %v710_v29  ;;  %v2580_v63 = vpop.permute.xlu0 %808 }
 0x11d   : > { %v739_v33 = vmul.f32 %v734_v28, %v2523_v30  ;;  %v740_v34 = vmul.f32 %v738_v20, %v2523_v30  ;;  %3005 = vst [vmem:[#allocation7_spill] sm:$0xff] %v2580_v63  ;;  %v819_v29 = vmul.f32 %v814_v62, %v2580_v63  ;;  %v820_v58 = vmul.f32 %v818_v12, %v2580_v63 }
 0x11e   : > { %1783 = vset.pattern.permute.xlu1 %v3003_v59  ;;  %v830_v28 = vrot.slane %v2531_v25, %v2207_v19  ;;  %v834_v20 = vrot.slane %v2533_v2, %v2207_v19  ;;  %v862_v59 = vrot.slane %v2531_v25, %v2258_v49 }
 0x11f   : > { %1327 = vperm.xlu1 %1783, %v2050_v23   ;;  %v741_v7 = vadd.f32 %v739_v33, %v725_v14  ;;  %v742_v9 = vadd.f32 %v740_v34, %v726_v39  ;;  %v3007_v34 = vmov 13  }
 0x120   : > { %v2602_v16 = vpop.permute.xlu0 %856 }
 0x121   : > { %v2547_v61 = vpop.permute.xlu1 %744  ;;  %3008 = vst [vmem:[#allocation9_spill] sm:$0xff] %v2602_v16 }
 0x122   : > { %v755_v4 = vmul.f32 %v750_v26, %v2547_v61  ;;  %v756_v23 = vmul.f32 %v754_v31, %v2547_v61  ;;  %v866_v26 = vrot.slane %v2533_v2, %v2258_v49  ;;  %v846_v31 = vrot.slane %v2531_v25, %v2217_v50 }
 0x123   : > { %1784 = vset.pattern.permute.xlu1 %v2995_v15 }
 0x124   : > { %v757_v1 = vadd.f32 %v755_v4, %v741_v7  ;;  %v758_v52 = vadd.f32 %v756_v23, %v742_v9  ;;  %1187 = vperm.xlu1 %1784, %v2062_v24  }
 0x126   : > { %v2557_v35 = vpop.permute.xlu1 %776  ;;  %v773_v6 = vadd.f32 %v771_v22, %v757_v1  ;;  %v774_v15 = vadd.f32 %v772_v51, %v758_v52  ;;  %v1889_v52 = vmov 1966171168   ;;  %v867_v51 = vmul.f32 %v862_v59, %v2602_v16 }
 0x127   : > { %v787_v47 = vmul.f32 %v782_v48, %v2557_v35  ;;  %v788_v13 = vmul.f32 %v786_v5, %v2557_v35  ;;  %v903_v22 = vunpack.c.l.s4 %v1889_v52  ;;  %v868_v48 = vmul.f32 %v866_v26, %v2602_v16 }
 0x128   : > { %1786 = vset.pattern.permute.xlu1 %v1888_v46 }
 0x129   : > { %1351 = vperm.xlu1 %1786, %v1962_v0   ;;  %v789_v32 = vadd.f32 %v787_v47, %v773_v6  ;;  %v790_v11 = vadd.f32 %v788_v13, %v774_v15  ;;  %v878_v15 = vrot.slane %v2531_v25, %v2261_v53  ;;  %v882_v47 = vrot.slane %v2533_v2, %v2261_v53  ;;  %v3011_v2 = vld [vmem:[#allocation5_spill] sm:$0xff] }
 0x12a   : > { %v904_v12 = vunpack.c.0.s8 %v903_v22 }
 0x12b   : > { %v2574_v3 = vpop.permute.xlu1 %792 }
 0x12c   : > { %3004 = vst [vmem:[#allocation6_spill] sm:$0xff] %v2574_v3  ;;  %v803_v57 = vmul.f32 %v798_v55, %v2574_v3  ;;  %v804_v0 = vmul.f32 %v802_v21, %v2574_v3 }
 0x12d   : > { %1787 = vset.pattern.permute.xlu1 %v2998_v36 }
 0x12e   : > { %v805_v17 = vadd.f32 %v803_v57, %v789_v32  ;;  %v806_v10 = vadd.f32 %v804_v0, %v790_v11  ;;  %1235 = vperm.xlu1 %1787, %v2062_v24   ;;  %v2625_v57 = vsub.s32 %v904_v12, %v3011_v2  ;;  %v934_v12 = vpop.permute.xlu0 %933 }
 0x130   : > { %v2584_v38 = vpop.permute.xlu1 %824  ;;  %v821_v14 = vadd.f32 %v819_v29, %v805_v17  ;;  %v822_v36 = vadd.f32 %v820_v58, %v806_v10  ;;  %3012 = vst [vmem:[#allocation5_spill] sm:$0xff] %v2625_v57  ;;  %v3013_v10 = vmov 23  }
 0x131   : > { %3006 = vst [vmem:[#allocation8_spill] sm:$0xff] %v2584_v38  ;;  %v835_v39 = vmul.f32 %v830_v28, %v2584_v38  ;;  %v836_v33 = vmul.f32 %v834_v20, %v2584_v38  ;;  %v1800_v28 = vld [vmem:[%s2959_s2] sm:$0xff] }
 0x132   : > { %1789 = vset.pattern.permute.xlu1 %v3007_v34  ;;  %v3015_v34 = vmov 0 }
 0x133   : > { %1283 = vperm.xlu1 %1789, %v2062_v24   ;;  %v837_v9 = vadd.f32 %v835_v39, %v821_v14  ;;  %v838_v4 = vadd.f32 %v836_v33, %v822_v36  ;;  %v3014_v33 = vlaneseq }
 0x135   : > { %v2604_v7 = vpop.permute.xlu1 %840  ;;  %vm2635_vm0 = vcmp.lt.s32.totalorder %v3014_v33, 256 }
 0x136   : > { %3009 = vst [vmem:[#allocation10_spill] sm:$0xff] %v2604_v7  ;;  %v851_v23 = vmul.f32 %v846_v31, %v2604_v7  ;;  %v852_v1 = vmul.f32 %v850_v40, %v2604_v7  ;;  %v3016_v34 = vsel %vm2635_vm0, 4294967295, %v3015_v34 }
 0x137   : > { %1790 = vset.pattern.permute.xlu1 %v3002_v37  ;;  %3017 = vst [vmem:[#allocation12_spill] sm:$0xff] %v3016_v34 }
 0x138   : > { %1307 = vperm.xlu1 %1790, %v2062_v24   ;;  %v853_v5 = vadd.f32 %v851_v23, %v837_v9  ;;  %v854_v6 = vadd.f32 %v852_v1, %v838_v4  ;;  %v1799_v24 = vld [vmem:[%s2959_s2 + $0x8] sm:$0xff] }
 0x13a   : > { %v2616_v13 = vpop.permute.xlu1 %872  ;;  %v869_v37 = vadd.f32 %v867_v51, %v853_v5  ;;  %v870_v55 = vadd.f32 %v868_v48, %v854_v6  ;;  %v189_v48 = vld [vmem:[%s185_s29] sm:$0x3] }
 0x13b   : > { %3010 = vst [vmem:[#allocation11_spill] sm:$0xff] %v2616_v13  ;;  %v883_v21 = vmul.f32 %v878_v15, %v2616_v13  ;;  %v884_v62 = vmul.f32 %v882_v47, %v2616_v13 }
 0x13c   : > { %1792 = vset.pattern.permute.xlu1 %v1888_v46 }
 0x13d   : > { %1355 = vperm.xlu1 %1792, %v1799_v24   ;;  %v885_v25 = vadd.f32 %v883_v21, %v869_v37  ;;  %v886_v32 = vadd.f32 %v884_v62, %v870_v55 }
 0x13f   : > { %v889_v11 = vpop.permute.xlu1 %888 }
 0x140   : > { %v891_v0 = vadd.f32 %v889_v11, %v885_v25  ;;  %v892_v17 = vadd.f32 %v889_v11, %v886_v32 }
 0x141   : > { %1793 = vset.pattern.permute.xlu1 %v3013_v10  ;;  %v1040_v10 = vpop.permute.xlu0 %1039 }
 0x142   : > { %v893_v29 = vmul.f32 0.5, %v891_v0  ;;  %v894_v46 = vmul.f32 0.5, %v892_v17  ;;  %v1521_v58 = vcombine.low %v891_v0, %v892_v17  ;;  %1489 = vperm.xlu1 %1793, %v1800_v28  }
 0x144   : > { %v895_v20 = vmul.f32 1.442695, %v893_v29  ;;  %v897_v14 = vmul.f32 1.442695, %v894_v46  ;;  %v1528_v36 = vrot.slane %v1521_v58, %v2625_v57  ;;  %v954_v39 = vpop.permute.xlu1 %953 }
 0x146   : > { %1795 = vpow2.f32 %v895_v20  ;;  %v1535_v59 = vrot.slane %v1528_v36, %v2625_v57  ;;  %v1539_v26 = vcombine.high %v1528_v36, %v1528_v36 }
 0x147   : > { %1797 = vpow2.f32 %v897_v14  ;;  %v971_v14 = vpop.permute.xlu0 %970 }
 0x148   : > { %v1546_v31 = vrot.slane %v1539_v26, %v2625_v57  ;;  %1637 = vst.msk [vmem:[%s2641_s26 + $0x1] ss:$4 sm:$0x3] %vm2635_vm0, %v1535_v59 }
 0x149   : > { %v2646_v40 = vpop.permute.xlu1 %937 }
 0x14a   : > { %1638 = vst.msk [vmem:[%s2641_s26 + $0x2] ss:$4 sm:$0x3] %vm2635_vm0, %v1546_v31 }
 0x14b   : > { %v2675_v31 = vpop.permute.xlu0 %975 }
 0x14e   : > { %v992_v9 = vpop.permute.xlu1 %991 }
 0x150   : > { %v1796_v4 = vpop.eup %1795 }
 0x151   : > { %v1798_v23 = vpop.eup %1797 }
 0x152   : > { %v901_v1 = vcombine.low %v1796_v4, %v1798_v23 }
 0x153   : > { %v1016_v52 = vpop.permute.xlu1 %1015 }
 0x154   : > { %v908_v22 = vrot.slane %v901_v1, %v2625_v57 }
 0x156   : > { %v909_v51 = vcombine.high %v908_v22, %v908_v22 }
 0x158   : > { %v916_v5 = vrot.slane %v909_v51, %v2625_v57  ;;  %v1064_v6 = vpop.permute.xlu1 %1063 }
 0x15a   : > { %v918_v15 = vmul.f32 %v916_v5, %v189_v48 }
 0x15c   : > { %v923_v47 = vrot.slane %v918_v15, %v2137_v41  ;;  %v927_v37 = vrot.slane %v918_v15, %v2140_v42 }
 0x15d   : > { %v2659_v55 = vpop.permute.xlu1 %957 }
 0x15e   : > { %v930_v21 = vadd.f32 %v923_v47, %v891_v0  ;;  %v931_v62 = vadd.f32 %v927_v37, %v892_v17  ;;  %v1020_v47 = vpop.permute.xlu0 %1019 }
 0x160   : > { %v943_v24 = vrot.slane %v930_v21, %v2137_v41  ;;  %v947_v25 = vrot.slane %v931_v62, %v2137_v41 }
 0x162   : > { %v1112_v32 = vpop.permute.xlu1 %1111  ;;  %v948_v11 = vmul.f32 %v943_v24, %v934_v12  ;;  %v949_v2 = vmul.f32 %v947_v25, %v934_v12 }
 0x164   : > { %v960_v29 = vadd.f32 %v954_v39, %v948_v11  ;;  %v961_v46 = vadd.f32 %v954_v39, %v949_v2 }
 0x166   : > { %v964_v28 = vmax.f32 %v960_v29, 0.0  ;;  %v965_v20 = vmax.f32 %v961_v46, 0.0 }
 0x167   : > { %v2663_v58 = vpop.permute.xlu1 %1135 }
 0x168   : > { %v2666_v0 = vrot.slane %v964_v28, %v2137_v41  ;;  %v2669_v17 = vrot.slane %v965_v20, %v2137_v41  ;;  %v1001_v33 = vrot.slane %v964_v28, %v2140_v42  ;;  %v1005_v59 = vrot.slane %v965_v20, %v2140_v42 }
 0x169   : > { %v1025_v22 = vrot.slane %v964_v28, %v2169_v60  ;;  %v1029_v51 = vrot.slane %v965_v20, %v2169_v60  ;;  %v2684_v62 = vrot.slane %v964_v28, %v2204_v18  ;;  %v2687_v12 = vrot.slane %v965_v20, %v2204_v18 }
 0x16a   : > { %v986_v39 = vmul.f32 %v2666_v0, %v971_v14  ;;  %v987_v4 = vmul.f32 %v2669_v17, %v971_v14  ;;  %v1006_v23 = vmul.f32 %v1001_v33, %v992_v9  ;;  %v1007_v1 = vmul.f32 %v1005_v59, %v992_v9 }
 0x16b   : > { %v1030_v37 = vmul.f32 %v1025_v22, %v1016_v52  ;;  %v1031_v21 = vmul.f32 %v1029_v51, %v1016_v52  ;;  %v1054_v29 = vmul.f32 %v2684_v62, %v1040_v10  ;;  %v1055_v46 = vmul.f32 %v2687_v12, %v1040_v10  ;;  %v2697_v52 = vpop.permute.xlu0 %1207 }
 0x16c   : > { %v996_v36 = vpop.permute.xlu1 %995  ;;  %v1010_v5 = vadd.f32 %v1006_v23, %v986_v39  ;;  %v1011_v15 = vadd.f32 %v1007_v1, %v987_v4  ;;  %v2692_v14 = vrot.slane %v964_v28, %v2207_v19  ;;  %v2695_v39 = vrot.slane %v965_v20, %v2207_v19 }
 0x16d   : > { %v2700_v34 = vrot.slane %v964_v28, %v2217_v50 }
 0x16e   : > { %v1034_v11 = vadd.f32 %v1030_v37, %v1010_v5  ;;  %v1035_v2 = vadd.f32 %v1031_v21, %v1011_v15  ;;  %v2703_v5 = vrot.slane %v965_v20, %v2217_v50  ;;  %v1078_v15 = vmul.f32 %v2692_v14, %v1064_v6 }
 0x16f   : > { %v1079_v10 = vmul.f32 %v2695_v39, %v1064_v6  ;;  %v950_v37 = vmul.f32 %v943_v24, %v2646_v40  ;;  %v951_v21 = vmul.f32 %v947_v25, %v2646_v40  ;;  %v1088_v16 = vpop.permute.xlu0 %1087 }
 0x170   : > { %v1058_v4 = vadd.f32 %v1054_v29, %v1034_v11  ;;  %v1059_v23 = vadd.f32 %v1055_v46, %v1035_v2  ;;  %v1102_v11 = vmul.f32 %v2700_v34, %v1088_v16  ;;  %v1103_v2 = vmul.f32 %v2703_v5, %v1088_v16 }
 0x171   : > { %v2673_v26 = vpop.permute.xlu1 %1159  ;;  %v2712_v29 = vrot.slane %v964_v28, %v2258_v49  ;;  %v2715_v46 = vrot.slane %v965_v20, %v2258_v49  ;;  %v962_v6 = vadd.f32 %v2659_v55, %v950_v37  ;;  %v963_v24 = vadd.f32 %v2659_v55, %v951_v21 }
 0x172   : > { %v1082_v57 = vadd.f32 %v1078_v15, %v1058_v4  ;;  %v1083_v13 = vadd.f32 %v1079_v10, %v1059_v23  ;;  %v2722_v23 = vrot.slane %v964_v28, %v2261_v53  ;;  %v2725_v16 = vrot.slane %v965_v20, %v2261_v53 }
 0x173   : > { %v1126_v25 = vmul.f32 %v2712_v29, %v1112_v32  ;;  %v1127_v4 = vmul.f32 %v2715_v46, %v1112_v32  ;;  %v2727_v10 = vmax.f32 %v962_v6, 0.0  ;;  %v2729_v63 = vmax.f32 %v963_v24, 0.0 }
 0x174   : > { %v1106_v38 = vadd.f32 %v1102_v11, %v1082_v57  ;;  %v1107_v40 = vadd.f32 %v1103_v2, %v1083_v13  ;;  %v1150_v13 = vmul.f32 %v2722_v23, %v2663_v58  ;;  %v1151_v57 = vmul.f32 %v2725_v16, %v2663_v58 }
 0x175   : > { %v1008_v55 = vmul.f32 %v1001_v33, %v996_v36  ;;  %v1009_v32 = vmul.f32 %v1005_v59, %v996_v36  ;;  %v2737_v20 = vrot.slane %v2727_v10, %v2137_v41  ;;  %v2741_v11 = vrot.slane %v2729_v63, %v2137_v41 }
 0x176   : > { %v2681_v48 = vpop.permute.xlu1 %1183  ;;  %v1130_v37 = vadd.f32 %v1126_v25, %v1106_v38  ;;  %v1131_v3 = vadd.f32 %v1127_v4, %v1107_v40  ;;  %v988_v2 = vmul.f32 %v2666_v0, %v2675_v31  ;;  %v989_v6 = vmul.f32 %v2669_v17, %v2675_v31  ;;  %v1092_v40 = vpop.permute.xlu0 %1091 }
 0x177   : > { %v1174_v58 = vmul.f32 %v2737_v20, %v2673_v26  ;;  %v1032_v36 = vmul.f32 %v1025_v22, %v1020_v47  ;;  %v1033_v33 = vmul.f32 %v1029_v51, %v1020_v47  ;;  %v2753_v4 = vrot.slane %v2727_v10, %v2140_v42 }
 0x178   : > { %v1154_v28 = vadd.f32 %v1150_v13, %v1130_v37  ;;  %v1155_v21 = vadd.f32 %v1151_v57, %v1131_v3  ;;  %v1175_v3 = vmul.f32 %v2741_v11, %v2673_v26  ;;  %v1012_v59 = vadd.f32 %v1008_v55, %v988_v2 }
 0x179   : > { %v1013_v24 = vadd.f32 %v1009_v32, %v989_v6  ;;  %v2757_v0 = vrot.slane %v2729_v63, %v2140_v42  ;;  %v2761_v17 = vrot.slane %v2727_v10, %v2169_v60  ;;  %v2765_v26 = vrot.slane %v2729_v63, %v2169_v60 }
 0x17a   : > { %v1178_v41 = vadd.f32 %v1174_v58, %v1154_v28  ;;  %v1179_v25 = vadd.f32 %v1175_v3, %v1155_v21  ;;  %v1198_v47 = vmul.f32 %v2753_v4, %v2681_v48  ;;  %v1036_v37 = vadd.f32 %v1032_v36, %v1012_v59  ;;  %v1280_v21 = vpop.permute.xlu0 %1279 }
 0x17b   : > { %v1044_v9 = vpop.permute.xlu1 %1043  ;;  %v1199_v42 = vmul.f32 %v2757_v0, %v2681_v48  ;;  %v1037_v13 = vadd.f32 %v1033_v33, %v1013_v24  ;;  %v1223_v48 = vmul.f32 %v2765_v26, %v2697_v52  ;;  %v1104_v24 = vmul.f32 %v2700_v34, %v1092_v40 }
 0x17c   : > { %v1056_v31 = vmul.f32 %v2684_v62, %v1044_v9  ;;  %v1057_v22 = vmul.f32 %v2687_v12, %v1044_v9  ;;  %v1202_v32 = vadd.f32 %v1198_v47, %v1178_v41  ;;  %v2777_v62 = vrot.slane %v2727_v10, %v2204_v18 }
 0x17d   : > { %v1203_v60 = vadd.f32 %v1199_v42, %v1179_v25  ;;  %v2781_v12 = vrot.slane %v2729_v63, %v2204_v18  ;;  %v1222_v9 = vmul.f32 %v2761_v17, %v2697_v52  ;;  %v1105_v41 = vmul.f32 %v2703_v5, %v1092_v40 }
 0x17e   : > { %v1060_v28 = vadd.f32 %v1056_v31, %v1036_v37  ;;  %v2809_v47 = vrot.slane %v2729_v63, %v2217_v50 }
 0x17f   : > { %v1226_v36 = vadd.f32 %v1222_v9, %v1202_v32  ;;  %v1227_v52 = vadd.f32 %v1223_v48, %v1203_v60 }
 0x180   : > { %v1068_v1 = vpop.permute.xlu1 %1067 }
 0x181   : > { %v1080_v57 = vmul.f32 %v2692_v14, %v1068_v1  ;;  %v1081_v55 = vmul.f32 %v2695_v39, %v1068_v1  ;;  %v1061_v14 = vadd.f32 %v1057_v22, %v1037_v13  ;;  %v2789_v39 = vrot.slane %v2727_v10, %v2207_v19 }
 0x182   : > { %v2793_v1 = vrot.slane %v2729_v63, %v2207_v19  ;;  %v2819_v13 = vrot.slane %v2729_v63, %v2258_v49 }
 0x183   : > { %v1084_v58 = vadd.f32 %v1080_v57, %v1060_v28  ;;  %v1085_v3 = vadd.f32 %v1081_v55, %v1061_v14  ;;  %v1295_v55 = vmul.f32 %v2809_v47, %v1280_v21 }
 0x185   : > { %v1232_v7 = vpop.permute.xlu1 %1231  ;;  %v1108_v42 = vadd.f32 %v1104_v24, %v1084_v58 }
 0x186   : > { %v1246_v18 = vmul.f32 %v2777_v62, %v1232_v7  ;;  %v1247_v2 = vmul.f32 %v2781_v12, %v1232_v7  ;;  %v2805_v7 = vrot.slane %v2727_v10, %v2217_v50  ;;  %v2823_v50 = vrot.slane %v2727_v10, %v2261_v53 }
 0x188   : > { %v1250_v31 = vadd.f32 %v1246_v18, %v1226_v36  ;;  %v1251_v22 = vadd.f32 %v1247_v2, %v1227_v52  ;;  %v1294_v57 = vmul.f32 %v2805_v7, %v1280_v21 }
 0x18a   : > { %v1256_v15 = vpop.permute.xlu1 %1255 }
 0x18b   : > { %v1270_v33 = vmul.f32 %v2789_v39, %v1256_v15  ;;  %v1271_v59 = vmul.f32 %v2793_v1, %v1256_v15  ;;  %v1109_v15 = vadd.f32 %v1105_v41, %v1085_v3 }
 0x18d   : > { %v1274_v37 = vadd.f32 %v1270_v33, %v1250_v31 }
 0x18f   : > { %v1116_v38 = vpop.permute.xlu1 %1115  ;;  %v1298_v48 = vadd.f32 %v1294_v57, %v1274_v37 }
 0x190   : > { %v1128_v19 = vmul.f32 %v2712_v29, %v1116_v38  ;;  %v1129_v25 = vmul.f32 %v2715_v46, %v1116_v38  ;;  %v1164_v29 = vpop.permute.xlu0 %1163  ;;  %v1275_v46 = vadd.f32 %v1271_v59, %v1251_v22  ;;  %v2815_v38 = vrot.slane %v2727_v10, %v2258_v49 }
 0x191   : > { %v1177_v18 = vmul.f32 %v2741_v11, %v1164_v29 }
 0x192   : > { %v1299_v28 = vadd.f32 %v1295_v55, %v1275_v46 }
 0x194   : > { %v1140_v51 = vpop.permute.xlu1 %1139  ;;  %v1212_v58 = vpop.permute.xlu0 %1211 }
 0x195   : > { %v1152_v34 = vmul.f32 %v2722_v23, %v1140_v51  ;;  %v1153_v5 = vmul.f32 %v2725_v16, %v1140_v51  ;;  %v2827_v23 = vrot.slane %v2729_v63, %v2261_v53  ;;  %v1132_v16 = vadd.f32 %v1128_v19, %v1108_v42 }
 0x196   : > { %v1133_v51 = vadd.f32 %v1129_v25, %v1109_v15  ;;  %v1176_v63 = vmul.f32 %v2737_v20, %v1164_v29  ;;  %v1224_v20 = vmul.f32 %v2761_v17, %v1212_v58  ;;  %v1225_v11 = vmul.f32 %v2765_v26, %v1212_v58 }
 0x197   : > { %v1156_v49 = vadd.f32 %v1152_v34, %v1132_v16 }
 0x198   : > { %v1157_v9 = vadd.f32 %v1153_v5, %v1133_v51  ;;  %v1260_v22 = vpop.permute.xlu0 %1259 }
 0x199   : > { %v1304_v6 = vpop.permute.xlu1 %1303  ;;  %v1180_v36 = vadd.f32 %v1176_v63, %v1156_v49  ;;  %v1272_v42 = vmul.f32 %v2789_v39, %v1260_v22  ;;  %v1273_v15 = vmul.f32 %v2793_v1, %v1260_v22 }
 0x19a   : > { %v1318_v32 = vmul.f32 %v2815_v38, %v1304_v6  ;;  %v1319_v60 = vmul.f32 %v2819_v13, %v1304_v6  ;;  %v1181_v52 = vadd.f32 %v1177_v18, %v1157_v9 }
 0x19c   : > { %v1322_v3 = vadd.f32 %v1318_v32, %v1298_v48  ;;  %v1323_v6 = vadd.f32 %v1319_v60, %v1299_v28 }
 0x19e   : > { %v1328_v40 = vpop.permute.xlu1 %1327 }
 0x19f   : > { %v1342_v10 = vmul.f32 %v2823_v50, %v1328_v40  ;;  %v1343_v14 = vmul.f32 %v2827_v23, %v1328_v40 }
 0x1a1   : > { %v1346_v33 = vadd.f32 %v1342_v10, %v1322_v3  ;;  %v1347_v59 = vadd.f32 %v1343_v14, %v1323_v6 }
 0x1a3   : > { %v1188_v53 = vpop.permute.xlu1 %1187 }
 0x1a4   : > { %v1200_v2 = vmul.f32 %v2753_v4, %v1188_v53  ;;  %v1201_v21 = vmul.f32 %v2757_v0, %v1188_v53 }
 0x1a6   : > { %v1204_v24 = vadd.f32 %v1200_v2, %v1180_v36  ;;  %v1205_v41 = vadd.f32 %v1201_v21, %v1181_v52  ;;  %v1332_v52 = vpop.permute.xlu0 %1331 }
 0x1a8   : > { %v1352_v19 = vpop.permute.xlu1 %1351  ;;  %v1228_v34 = vadd.f32 %v1224_v20, %v1204_v24  ;;  %v1229_v5 = vadd.f32 %v1225_v11, %v1205_v41  ;;  %v1345_v20 = vmul.f32 %v2827_v23, %v1332_v52 }
 0x1a9   : > { %v1358_v25 = vadd.f32 %v1352_v19, %v1346_v33  ;;  %v1359_v31 = vadd.f32 %v1352_v19, %v1347_v59 }
 0x1ab   : > { %v2841_v4 = vmax.f32 %v1358_v25, 0.0  ;;  %v2843_v0 = vmax.f32 %v1359_v31, 0.0  ;;  %v1344_v31 = vmul.f32 %v2823_v50, %v1332_v52  ;;  %v3020_v52 = vld [vmem:[#allocation8_spill] sm:$0xff] }
 0x1ad   : > { %v1368_v40 = vrot.slane %v2841_v4, 6  ;;  %v1369_v29 = vrot.slane %v2843_v0, 6  ;;  %v1374_v37 = vrot.slane %v2841_v4, 7  ;;  %v1375_v17 = vrot.slane %v2843_v0, 7  ;;  %v1236_v26 = vpop.permute.xlu1 %1235 }
 0x1ae   : > { %v1248_v46 = vmul.f32 %v2777_v62, %v1236_v26  ;;  %v1249_v16 = vmul.f32 %v2781_v12, %v1236_v26  ;;  %v1382_v39 = vmul.f32 %v2841_v4, %v2491_v43  ;;  %v1383_v1 = vmul.f32 %v2843_v0, %v2491_v43 }
 0x1af   : > { %v1372_v51 = vmul.f32 %v1368_v40, %v2455_v56  ;;  %v1373_v57 = vmul.f32 %v1369_v29, %v2455_v56  ;;  %v1378_v55 = vmul.f32 %v1374_v37, %v2473_v8  ;;  %v1379_v32 = vmul.f32 %v1375_v17, %v2473_v8 }
 0x1b0   : > { %v1252_v60 = vadd.f32 %v1248_v46, %v1228_v34  ;;  %v1253_v49 = vadd.f32 %v1249_v16, %v1229_v5  ;;  %v1386_v62 = vrot.slane %v2841_v4, 1  ;;  %v1387_v12 = vrot.slane %v2843_v0, 1 }
 0x1b1   : > { %v1380_v9 = vadd.f32 %v1378_v55, %v1372_v51  ;;  %v1381_v48 = vadd.f32 %v1379_v32, %v1373_v57  ;;  %v1394_v28 = vrot.slane %v2841_v4, 2  ;;  %v1395_v43 = vrot.slane %v2843_v0, 2 }
 0x1b2   : > { %v1284_v10 = vpop.permute.xlu1 %1283  ;;  %v1276_v14 = vadd.f32 %v1272_v42, %v1252_v60  ;;  %v1277_v53 = vadd.f32 %v1273_v15, %v1253_v49  ;;  %v1390_v56 = vmul.f32 %v1386_v62, %v2495_v44  ;;  %v1391_v63 = vmul.f32 %v1387_v12, %v2495_v44 }
 0x1b3   : > { %v1296_v8 = vmul.f32 %v2805_v7, %v1284_v10  ;;  %v1297_v18 = vmul.f32 %v2809_v47, %v1284_v10  ;;  %v1384_v2 = vadd.f32 %v1382_v39, %v1380_v9  ;;  %v1385_v21 = vadd.f32 %v1383_v1, %v1381_v48 }
 0x1b4   : > { %v1402_v6 = vrot.slane %v2841_v4, 3  ;;  %v1403_v36 = vrot.slane %v2843_v0, 3  ;;  %v1398_v33 = vmul.f32 %v1394_v28, %v2511_v27  ;;  %v1399_v59 = vmul.f32 %v1395_v43, %v2511_v27 }
 0x1b5   : > { %v1392_v58 = vadd.f32 %v1390_v56, %v1384_v2  ;;  %v1393_v3 = vadd.f32 %v1391_v63, %v1385_v21  ;;  %v1300_v24 = vadd.f32 %v1296_v8, %v1276_v14  ;;  %v1301_v41 = vadd.f32 %v1297_v18, %v1277_v53  ;;  %v3018_v63 = vld [vmem:[#allocation6_spill] sm:$0xff] }
 0x1b6   : > { %v1406_v11 = vmul.f32 %v1402_v6, %v2521_v54  ;;  %v1407_v22 = vmul.f32 %v1403_v36, %v2521_v54  ;;  %v1410_v27 = vrot.slane %v2841_v4, 4  ;;  %v1411_v34 = vrot.slane %v2843_v0, 4 }
 0x1b7   : > { %v1308_v44 = vpop.permute.xlu1 %1307  ;;  %v1400_v19 = vadd.f32 %v1398_v33, %v1392_v58  ;;  %v1401_v25 = vadd.f32 %v1399_v59, %v1393_v3  ;;  %v1418_v37 = vrot.slane %v2841_v4, 5  ;;  %v1419_v50 = vrot.slane %v2843_v0, 5  ;;  %v3019_v3 = vld [vmem:[#allocation7_spill] sm:$0xff] }
 0x1b8   : > { %v1320_v7 = vmul.f32 %v2815_v38, %v1308_v44  ;;  %v1321_v47 = vmul.f32 %v2819_v13, %v1308_v44  ;;  %v1414_v26 = vmul.f32 %v1410_v27, %v2523_v30  ;;  %v1415_v54 = vmul.f32 %v1411_v34, %v2523_v30  ;;  %v3022_v27 = vld [vmem:[#allocation9_spill] sm:$0xff] }
 0x1b9   : > { %v1408_v13 = vadd.f32 %v1406_v11, %v1400_v19  ;;  %v1409_v29 = vadd.f32 %v1407_v22, %v1401_v25  ;;  %v1422_v51 = vmul.f32 %v1418_v37, %v2547_v61  ;;  %v1423_v57 = vmul.f32 %v1419_v50, %v2547_v61 }
 0x1ba   : > { %v1324_v42 = vadd.f32 %v1320_v7, %v1300_v24  ;;  %v1325_v15 = vadd.f32 %v1321_v47, %v1301_v41  ;;  %v3021_v7 = vld [vmem:[#allocation10_spill] sm:$0xff] }
 0x1bb   : > { %v1416_v39 = vadd.f32 %v1414_v26, %v1408_v13  ;;  %v1417_v1 = vadd.f32 %v1415_v54, %v1409_v29  ;;  %v3023_v29 = vld [vmem:[#allocation11_spill] sm:$0xff] }
 0x1bc   : > { %v1356_v5 = vpop.permute.xlu1 %1355  ;;  %v1348_v38 = vadd.f32 %v1344_v31, %v1324_v42  ;;  %v1349_v40 = vadd.f32 %v1345_v20, %v1325_v15 }
 0x1bd   : > { %v1424_v49 = vadd.f32 %v1422_v51, %v1416_v39  ;;  %v1425_v0 = vadd.f32 %v1423_v57, %v1417_v1 }
 0x1be   : > { %v1360_v23 = vadd.f32 %v1356_v5, %v1348_v38  ;;  %v1361_v17 = vadd.f32 %v1356_v5, %v1349_v40 }
 0x1c0   : > { %v1364_v46 = vmax.f32 %v1360_v23, 0.0  ;;  %v1365_v16 = vmax.f32 %v1361_v17, 0.0 }
 0x1c1   : > { %v1490_v25 = vpop.permute.xlu1 %1489 }
 0x1c2   : > { %v1428_v55 = vrot.slane %v1364_v46, 6  ;;  %v1429_v32 = vrot.slane %v1365_v16, 6  ;;  %v1436_v60 = vrot.slane %v1364_v46, 7  ;;  %v1437_v4 = vrot.slane %v1365_v16, 7 }
 0x1c3   : > { %v1448_v9 = vrot.slane %v1364_v46, 1  ;;  %v1449_v30 = vrot.slane %v1365_v16, 1  ;;  %v1456_v14 = vrot.slane %v1364_v46, 2  ;;  %v1457_v61 = vrot.slane %v1365_v16, 2 }
 0x1c4   : > { %v1432_v62 = vmul.f32 %v1428_v55, %v2553_v45  ;;  %v1433_v12 = vmul.f32 %v1429_v32, %v2553_v45  ;;  %v1440_v43 = vmul.f32 %v1436_v60, %v2557_v35  ;;  %v1441_v10 = vmul.f32 %v1437_v4, %v2557_v35 }
 0x1c5   : > { %v1444_v8 = vmul.f32 %v1364_v46, %v3018_v63  ;;  %v1445_v18 = vmul.f32 %v1365_v16, %v3018_v63  ;;  %v1464_v2 = vrot.slane %v1364_v46, 3  ;;  %v1465_v21 = vrot.slane %v1365_v16, 3 }
 0x1c6   : > { %v1434_v48 = vadd.f32 %v1432_v62, %v1424_v49  ;;  %v1435_v28 = vadd.f32 %v1433_v12, %v1425_v0  ;;  %v1452_v6 = vmul.f32 %v1448_v9, %v3019_v3  ;;  %v1453_v36 = vmul.f32 %v1449_v30, %v3019_v3 }
 0x1c7   : > { %v1460_v33 = vmul.f32 %v1456_v14, %v3020_v52  ;;  %v1461_v35 = vmul.f32 %v1457_v61, %v3020_v52  ;;  %v1472_v41 = vrot.slane %v1364_v46, 4  ;;  %v1473_v44 = vrot.slane %v1365_v16, 4 }
 0x1c8   : > { %v1442_v53 = vadd.f32 %v1440_v43, %v1434_v48  ;;  %v1443_v56 = vadd.f32 %v1441_v10, %v1435_v28  ;;  %v1468_v47 = vmul.f32 %v1464_v2, %v3021_v7  ;;  %v1469_v19 = vmul.f32 %v1465_v21, %v3021_v7 }
 0x1c9   : > { %v1480_v11 = vrot.slane %v1364_v46, 5  ;;  %v1481_v22 = vrot.slane %v1365_v16, 5  ;;  %v1476_v34 = vmul.f32 %v1472_v41, %v3022_v27  ;;  %v1477_v5 = vmul.f32 %v1473_v44, %v3022_v27  ;;  %v3024_v16 = vld [vmem:[#allocation5_spill] sm:$0xff] }
 0x1ca   : > { %v1446_v58 = vadd.f32 %v1444_v8, %v1442_v53  ;;  %v1447_v45 = vadd.f32 %v1445_v18, %v1443_v56  ;;  %v1491_v38 = vrot.slane %v1490_v25, 6 }
 0x1cb   : > { %v1484_v37 = vmul.f32 %v1480_v11, %v3023_v29  ;;  %v1485_v50 = vmul.f32 %v1481_v22, %v3023_v29 }
 0x1cc   : > { %v1454_v59 = vadd.f32 %v1452_v6, %v1446_v58  ;;  %v1455_v24 = vadd.f32 %v1453_v36, %v1447_v45 }
 0x1ce   : > { %v1462_v31 = vadd.f32 %v1460_v33, %v1454_v59  ;;  %v1463_v20 = vadd.f32 %v1461_v35, %v1455_v24 }
 0x1d0   : > { %v1470_v42 = vadd.f32 %v1468_v47, %v1462_v31  ;;  %v1471_v15 = vadd.f32 %v1469_v19, %v1463_v20 }
 0x1d2   : > { %v1478_v40 = vadd.f32 %v1476_v34, %v1470_v42  ;;  %v1479_v13 = vadd.f32 %v1477_v5, %v1471_v15 }
 0x1d4   : > { %v1486_v23 = vadd.f32 %v1484_v37, %v1478_v40  ;;  %v1487_v17 = vadd.f32 %v1485_v50, %v1479_v13 }
 0x1d6   : > { %v1493_v26 = vadd.f32 %v1491_v38, %v1486_v23  ;;  %v1494_v54 = vadd.f32 %v1491_v38, %v1487_v17 }
 0x1d8   : > { %v1497_v46 = vcombine.low %v1493_v26, %v1494_v54 }
 0x1da   : > { %v1504_v39 = vrot.slane %v1497_v46, %v3024_v16 }
 0x1dc   : > { %v1511_v1 = vrot.slane %v1504_v39, %v3024_v16 }
 0x1de   : > { %v1512_v51 = vcombine.high %v1511_v1, %v1511_v1 }
 0x1e0   : > { %1518 = vst.msk [vmem:[%s2641_s26] ss:$4 sm:$0x3] %vm2635_vm0, %v1512_v51 }
 0x1e1   : > { %1814 = shalt.err (!%p1811_p3)
}
 0x1e2   : > { %s1815_s17 = scalar_lea.hbm %s2910_s7, 128  ;;  %s1819_s24 = scalar_lea.hbm %s2960_s3, 512 }
 0x1e3   : > { %p1816_p4 = scmp.ne.s32.totalorder %s2910_s7, %s1815_s17  ;;  %p1820_p9 = scmp.lt.u32.totalorder %s2910_s7, %s2960_s3 }
 0x1e4   : > { %p1821_p10 = scmp.lt.u32.totalorder %s1819_s24, %s1815_s17  ;;  %p1823_p12 = scmp.lt.u32.totalorder %s1815_s17, %s2910_s7 }
 0x1e5   : > { %p1817_p7 = pnand %p1816_p4, %p1949_p5 }
 0x1e6   : > { %p1822_p11 = por %p1821_p10, %p1820_p9 }
 0x1e7   : > { %p1818_p8 = pneg %p1817_p7 }
 0x1e8   : > { %p1824_p13 = por %p1823_p12, %p1822_p11 }
 0x1ea   : > { %p1825_p0 = pnand %p1824_p13, %p1818_p8 }
 0x1ec   : > { %1828 = shalt.err (!%p1825_p0)
}
 0x1ed   : > { %1645 = dma.vmem_to_hbm [thread:$0]  (%p1949_p5), %s2912_s4, 128, %s2910_s7, %s1551_s8  }
 0x1ee PF: > { %p1651_p1 = scmp.ge.s32.totalorder %s1863_s15, 2  ;;  %s1577_s27 = sand.u32 1, %s1851_s12  }
 0x1ef   : > { %s1578_s28 = scalar_lea.sflag [#allocation3], %s1577_s27 }
 0x1f0   : > { %p1648_p2 = pnand %p1651_p1, %p1953_p6 }
 0x1f2   : > { %1846 = dma.done.wait (!%p1648_p2), %s1578_s28, 128  }
 0x1f3   : > { %1848 = vsyncadd (!%p1648_p2), %s1578_s28, 4294967168  ;;  %p13_p3 = scmp.ge.s32.totalorder %s1936_s18, 6   ;;  %s3026_s12 = smov %s1855_s13 }
 0x1f4   : > { %s3027_s13 = smov %s1859_s14  ;;  %s3028_s14 = smov %s1947_s21 }
 0x1f5   : > { %s3029_s15 = smov %s1936_s18  ;;  %15 = sbr.rel (!%p13_p3) target bundleno = 3 (0x3), region = 72 }
 0x1fc   :  { %1583 = vsyncpa [#allocation3], 1 }
 0x1fd   :  { %1585 = vsyncpa [#allocation3 + $0x1], 1 }

</bundles_post_ra>
